<compile_context>
chip_gen: v6e
topology: v6e:2x2x1
jax: 0.10.0
libtpu: 0.0.40
codegen_flags: <defaults>
</compile_context>

<pallas_src>
import jax
import jax.numpy as jnp
from jax import lax
from jax.experimental import pallas as pl
from jax.experimental.pallas import tpu as pltpu


def _band_weights(w, W):
    """HWIO (3,3,Ci,Co) conv weights -> (3, W*Ci, W*Co) row-banded matrices.

    No column padding: wb[dy, xi*Ci + c, x*Co + o] == w[dy, xi - x + 1, c, o]
    when 0 <= xi - x + 1 < 3, else 0, so that
        out_row(y) = sum_dy  padded_row(y + dy) @ wb[dy]
    is exactly one output row of a stride-1, pad-1 3x3 convolution, where
    padded_row() only needs *vertical* zero padding (rows -1 and H).
    """
    kh, kw, Ci, Co = w.shape
    xi = jnp.arange(W)                                # input column
    xo = jnp.arange(W)                                # output column
    dx = jnp.arange(kw)
    # sel[dx, xi, x] = 1 iff xi == x + dx - 1; columns outside [0, W) simply
    # never match -> implicit zero padding in the width direction.
    sel = (xi[None, :, None] == xo[None, None, :] + dx[:, None, None] - (kw // 2)
           ).astype(w.dtype)
    wb = jnp.einsum('kix,dkco->dicxo', sel, w)        # (kh, W, Ci, W, Co)
    return wb.reshape(kh, W * Ci, W * Co)


def _block_diag(wb, nb):
    """Replicate the per-image band on the diagonal: (kh,K,N)->(kh,nb*K,nb*N)."""
    kh, K, Nm = wb.shape
    eye = jnp.eye(nb, dtype=wb.dtype)
    return jnp.einsum('ab,dkn->dakbn', eye, wb).reshape(kh, nb * K, nb * Nm)


def _pick_images_per_step(N, lane_unit):
    """Smallest divisor nb of N with nb*lane_unit >= 128 and a multiple of 128.

    Falls back to the whole batch in one step (block == full lane axis, which
    BlockSpec always allows) when no such divisor exists.
    """
    for nb in range(1, N + 1):
        if N % nb:
            continue
        lanes = nb * lane_unit
        if lanes >= 128 and lanes % 128 == 0:
            return nb
    return N


def _make_kernel(H, LCi, LCo):
    """Fused ResBlock kernel for one lane-packed block of images."""

    def kernel(x_ref, wb1_ref, wb2_ref, s1_ref, b1_ref, s2_ref, b2_ref,
               o_ref, xpad, ypad):
        x = x_ref[...]                                 # (H, LCi), lane-dense

        # ---- zero only the two vertical-border rows (7 and H+8) -------------
        # Re-done every grid step: scratch is per-TensorCore and the "parallel"
        # batch axis may be sharded across v7x's two cores.
        xpad[7:8, :] = jnp.zeros((1, LCi), jnp.float32)
        xpad[H + 8:H + 9, :] = jnp.zeros((1, LCi), jnp.float32)
        ypad[7:8, :] = jnp.zeros((1, LCo), jnp.float32)
        ypad[H + 8:H + 9, :] = jnp.zeros((1, LCo), jnp.float32)

        # ---- conv1: 3 row-banded MXU matmuls (one per kernel row dy) ---------
        # Bulk write at row 8 is sublane-aligned; dy-reads start at rows 7/8/9.
        xpad[8:8 + H, :] = x
        acc = jnp.zeros((H, LCo), jnp.float32)
        for dy in range(3):
            acc = acc + jnp.dot(xpad[7 + dy:7 + dy + H, :], wb1_ref[dy],
                                preferred_element_type=jnp.float32)

        # ---- BN1 (folded scale/bias, pre-tiled to lane layout) + ReLU --------
        y1 = jnp.maximum(acc * s1_ref[...] + b1_ref[...], 0.0)

        # ---- conv2: same banded structure on the re-padded intermediate ------
        ypad[8:8 + H, :] = y1
        acc2 = jnp.zeros((H, LCo), jnp.float32)
        for dy in range(3):
            acc2 = acc2 + jnp.dot(ypad[7 + dy:7 + dy + H, :], wb2_ref[dy],
                                  preferred_element_type=jnp.float32)

        # ---- BN2 + identity shortcut + ReLU; single unmasked wide store ------
        o_ref[...] = jnp.maximum(acc2 * s2_ref[...] + b2_ref[...] + x, 0.0)

    return kernel


def _build_call(H, LCi, LCo, n_steps, single_buffer_consts):
    Hp = H + 16                                        # data rows 8..H+7
    const_kw = {}
    if single_buffer_consts:
        # Constant-index blocks are never re-DMA'd; single-buffer them so they
        # don't occupy 2x VMEM residency (perf-review item #5).
        const_kw = dict(pipeline_mode=pl.Buffered(1))

    wmult = 1 if single_buffer_consts else 2
    vmem_bytes = (
        2 * H * LCi * 4 + 2 * H * LCo * 4              # in/out blocks (double-buffered)
        + wmult * 3 * LCi * LCo * 4                    # banded conv1 weights
        + wmult * 3 * LCo * LCo * 4                    # banded conv2 weights
        + wmult * 4 * LCo * 4                          # BN scale/bias tiles
        + Hp * (LCi + LCo) * 4                         # padded scratches
    )
    # Sized to footprint + headroom; never claim all of v7x's 64 MiB VMEM.
    vmem_limit = min(48 * 1024 * 1024, vmem_bytes + (16 << 20))

    grid_spec = pltpu.PrefetchScalarGridSpec(
        num_scalar_prefetch=0,
        grid=(n_steps,),
        in_specs=[
            pl.BlockSpec((H, LCi), lambda n: (0, n)),
            pl.BlockSpec((3, LCi, LCo), lambda n: (0, 0, 0), **const_kw),
            pl.BlockSpec((3, LCo, LCo), lambda n: (0, 0, 0), **const_kw),
            pl.BlockSpec((1, LCo), lambda n: (0, 0), **const_kw),
            pl.BlockSpec((1, LCo), lambda n: (0, 0), **const_kw),
            pl.BlockSpec((1, LCo), lambda n: (0, 0), **const_kw),
            pl.BlockSpec((1, LCo), lambda n: (0, 0), **const_kw),
        ],
        out_specs=pl.BlockSpec((H, LCo), lambda n: (0, n)),
        scratch_shapes=[
            pltpu.VMEM((Hp, LCi), jnp.float32),        # vertically padded input
            pltpu.VMEM((Hp, LCo), jnp.float32),        # vertically padded conv1 act
        ],
    )
    return pl.pallas_call(
        _make_kernel(H, LCi, LCo),
        out_shape=jax.ShapeDtypeStruct((H, n_steps * LCo), jnp.float32),
        grid_spec=grid_spec,
        compiler_params=pltpu.CompilerParams(
            dimension_semantics=("parallel",),
            vmem_limit_bytes=vmem_limit,
        ),
    )


def resblock_pallas(x_nhwc, w1, w2, s1, b1, s2, b2):
    """ResBlock forward (eval mode, identity shortcut).

    x_nhwc: (N,H,W,Cin) f32; w1/w2: (3,3,Ci,Co) HWIO; s*/b*: (Co,) folded BN.
    """
    N, H, W, Cin = x_nhwc.shape
    Cout = w1.shape[-1]
    assert w1.shape[:2] == (3, 3) and w2.shape[:2] == (3, 3)
    assert Cin == Cout, "identity shortcut requires Cin == Cout (stride=1, shortcut=None)"
    # TODO(synk): projection-shortcut / stride=2 ResBlock variants are not implemented.

    nb = _pick_images_per_step(N, W * Cin)             # images lane-packed per grid step
    n_steps = N // nb
    LCi = nb * W * Cin
    LCo = nb * W * Cout

    # Host-side layout plumbing (one-time, outside the kernel):
    #  * activations become an (H, N*W*C) slab so each grid step's block is a
    #    lane-dense (H, nb*W*C) tile,
    #  * conv weights become column-band matrices replicated block-diagonally
    #    over the nb lane-packed images,
    #  * folded BN scale/bias are pre-tiled to the same lane layout.
    x2 = jnp.transpose(x_nhwc, (1, 0, 2, 3)).reshape(H, N * W * Cin)
    wb1 = _block_diag(_band_weights(w1, W), nb)        # (3, LCi, LCo)
    wb2 = _block_diag(_band_weights(w2, W), nb)        # (3, LCo, LCo)
    s1t = jnp.tile(s1.reshape(-1), nb * W).reshape(1, LCo)
    b1t = jnp.tile(b1.reshape(-1), nb * W).reshape(1, LCo)
    s2t = jnp.tile(s2.reshape(-1), nb * W).reshape(1, LCo)
    b2t = jnp.tile(b2.reshape(-1), nb * W).reshape(1, LCo)

    args = (x2, wb1, wb2, s1t, b1t, s2t, b2t)
    try:
        out2 = _build_call(H, LCi, LCo, n_steps, single_buffer_consts=True)(*args)
    except Exception:
        # pl.Buffered(1) single-buffering of constant blocks is unsupported in
        # this JAX build; the constant blocks are < 1 MiB here, so falling back
        # to default double-buffering is harmless.
        out2 = _build_call(H, LCi, LCo, n_steps, single_buffer_consts=False)(*args)

    return jnp.transpose(out2.reshape(H, N, W, Cout), (1, 0, 2, 3))


def resblock_reference(x, w1, w2, s1, b1, s2, b2):
    """Pure-JAX reference (NHWC, HWIO) with folded BN (eval mode)."""
    dn = ('NHWC', 'HWIO', 'NHWC')
    y = lax.conv_general_dilated(x, w1, (1, 1), 'SAME', dimension_numbers=dn)
    y = jnp.maximum(y * s1 + b1, 0.0)
    y = lax.conv_general_dilated(y, w2, (1, 1), 'SAME', dimension_numbers=dn)
    y = y * s2 + b2
    return jnp.maximum(y + x, 0.0)


if __name__ == "__main__":
    key = jax.random.PRNGKey(0)
    N, C, H, W = 2, 4, 16, 16          # in_channel == out_channel, stride == 1
    ks = jax.random.split(key, 11)

    # PyTorch-convention input (NCHW), transposed to NHWC for the kernel.
    x_nchw = jax.random.normal(ks[0], (N, C, H, W), jnp.float32)
    x = jnp.transpose(x_nchw, (0, 2, 3, 1))

    # Deterministic synthetic parameters (shapes from the module's __init__).
    w1 = 0.1 * jax.random.normal(ks[1], (3, 3, C, C), jnp.float32)   # conv1 HWIO
    w2 = 0.1 * jax.random.normal(ks[2], (3, 3, C, C), jnp.float32)   # conv2 HWIO
    g1 = jax.random.uniform(ks[3], (C,), minval=0.5, maxval=1.5)
    be1 = 0.1 * jax.random.normal(ks[4], (C,))
    m1 = 0.1 * jax.random.normal(ks[5], (C,))
    v1 = jax.random.uniform(ks[6], (C,), minval=0.5, maxval=1.5)
    g2 = jax.random.uniform(ks[7], (C,), minval=0.5, maxval=1.5)
    be2 = 0.1 * jax.random.normal(ks[8], (C,))
    m2 = 0.1 * jax.random.normal(ks[9], (C,))
    v2 = jax.random.uniform(ks[10], (C,), minval=0.5, maxval=1.5)

    eps = 1e-5
    s1 = g1 / jnp.sqrt(v1 + eps)
    b1 = be1 - m1 * s1
    s2 = g2 / jnp.sqrt(v2 + eps)
    b2 = be2 - m2 * s2

    out = resblock_pallas(x, w1, w2, s1, b1, s2, b2)
    out = jax.block_until_ready(out)

    ref = resblock_reference(x, w1, w2, s1, b1, s2, b2)
    assert out.shape == (N, H, W, C)
    assert jnp.allclose(out, ref, atol=1e-4, rtol=1e-4), \
        f"max abs err {jnp.max(jnp.abs(out - ref))}"
    print("KERNEL_OK")
</pallas_src>

<mosaic_0001>
module attributes {stable_mosaic.version = 11 : i64} {
  func.func @kernel(%arg0: i32, %arg1: memref<16x128xf32, #tpu.memory_space<vmem>>, %arg2: memref<3x128x128xf32, #tpu.memory_space<vmem>>, %arg3: memref<3x128x128xf32, #tpu.memory_space<vmem>>, %arg4: memref<1x128xf32, #tpu.memory_space<vmem>>, %arg5: memref<1x128xf32, #tpu.memory_space<vmem>>, %arg6: memref<1x128xf32, #tpu.memory_space<vmem>>, %arg7: memref<1x128xf32, #tpu.memory_space<vmem>>, %arg8: memref<16x128xf32, #tpu.memory_space<vmem>>, %arg9: memref<32x128xf32, #tpu.memory_space<vmem>>, %arg10: memref<32x128xf32, #tpu.memory_space<vmem>>) attributes {dimension_semantics = [#tpu.dimension_semantics<parallel>], iteration_bounds = array<i64: 1>, scalar_prefetch = 0 : i64, scratch_operands = 2 : i64, tpu.core_type = #tpu.core_type<tc>, window_params = [{transform_indices = @transform_0, window_bounds = array<i64: 16, 128>}, {pipeline_mode = #tpu.pipeline_mode<synchronous>, transform_indices = @transform_1, window_bounds = array<i64: 3, 128, 128>}, {pipeline_mode = #tpu.pipeline_mode<synchronous>, transform_indices = @transform_2, window_bounds = array<i64: 3, 128, 128>}, {pipeline_mode = #tpu.pipeline_mode<synchronous>, transform_indices = @transform_3, window_bounds = array<i64: 1, 128>}, {pipeline_mode = #tpu.pipeline_mode<synchronous>, transform_indices = @transform_4, window_bounds = array<i64: 1, 128>}, {pipeline_mode = #tpu.pipeline_mode<synchronous>, transform_indices = @transform_5, window_bounds = array<i64: 1, 128>}, {pipeline_mode = #tpu.pipeline_mode<synchronous>, transform_indices = @transform_6, window_bounds = array<i64: 1, 128>}, {transform_indices = @transform_7, window_bounds = array<i64: 16, 128>}]} {
    %c0 = arith.constant 0 : index
    %c0_0 = arith.constant 0 : index
    %0 = vector.load %arg1[%c0, %c0_0] : memref<16x128xf32, #tpu.memory_space<vmem>>, vector<16x128xf32>
    %cst = arith.constant 0.000000e+00 : f32
    %1 = vector.broadcast %cst : f32 to vector<1x128xf32>
    %c7 = arith.constant 7 : index
    %c0_1 = arith.constant 0 : index
    %2 = vector.load %arg9[%c7, %c0_1] : memref<32x128xf32, #tpu.memory_space<vmem>>, vector<1x128xf32>
    tpu.vector_store %arg9[%c7, %c0_1], %1 {strides = array<i32>} : memref<32x128xf32, #tpu.memory_space<vmem>>, vector<1x128xf32>,
    %cst_2 = arith.constant 0.000000e+00 : f32
    %3 = vector.broadcast %cst_2 : f32 to vector<1x128xf32>
    %c24 = arith.constant 24 : index
    %c0_3 = arith.constant 0 : index
    %4 = vector.load %arg9[%c24, %c0_3] : memref<32x128xf32, #tpu.memory_space<vmem>>, vector<1x128xf32>
    tpu.vector_store %arg9[%c24, %c0_3], %3 {strides = array<i32>} : memref<32x128xf32, #tpu.memory_space<vmem>>, vector<1x128xf32>,
    %cst_4 = arith.constant 0.000000e+00 : f32
    %5 = vector.broadcast %cst_4 : f32 to vector<1x128xf32>
    %c7_5 = arith.constant 7 : index
    %c0_6 = arith.constant 0 : index
    %6 = vector.load %arg10[%c7_5, %c0_6] : memref<32x128xf32, #tpu.memory_space<vmem>>, vector<1x128xf32>
    tpu.vector_store %arg10[%c7_5, %c0_6], %5 {strides = array<i32>} : memref<32x128xf32, #tpu.memory_space<vmem>>, vector<1x128xf32>,
    %cst_7 = arith.constant 0.000000e+00 : f32
    %7 = vector.broadcast %cst_7 : f32 to vector<1x128xf32>
    %c24_8 = arith.constant 24 : index
    %c0_9 = arith.constant 0 : index
    %8 = vector.load %arg10[%c24_8, %c0_9] : memref<32x128xf32, #tpu.memory_space<vmem>>, vector<1x128xf32>
    tpu.vector_store %arg10[%c24_8, %c0_9], %7 {strides = array<i32>} : memref<32x128xf32, #tpu.memory_space<vmem>>, vector<1x128xf32>,
    %c8 = arith.constant 8 : index
    %c0_10 = arith.constant 0 : index
    %9 = vector.load %arg9[%c8, %c0_10] : memref<32x128xf32, #tpu.memory_space<vmem>>, vector<16x128xf32>
    tpu.vector_store %arg9[%c8, %c0_10], %0 {strides = array<i32>} : memref<32x128xf32, #tpu.memory_space<vmem>>, vector<16x128xf32>,
    %cst_11 = arith.constant 0.000000e+00 : f32
    %10 = vector.broadcast %cst_11 : f32 to vector<16x128xf32>
    %c7_12 = arith.constant 7 : index
    %c0_13 = arith.constant 0 : index
    %11 = vector.load %arg9[%c7_12, %c0_13] : memref<32x128xf32, #tpu.memory_space<vmem>>, vector<16x128xf32>
    %c0_14 = arith.constant 0 : index
    %c0_15 = arith.constant 0 : index
    %c0_16 = arith.constant 0 : index
    %12 = vector.load %arg2[%c0_14, %c0_15, %c0_16] : memref<3x128x128xf32, #tpu.memory_space<vmem>>, vector<1x128x128xf32>
    %13 = vector.shape_cast %12 : vector<1x128x128xf32> to vector<128x128xf32>
    %cst_17 = arith.constant dense<0.000000e+00> : vector<16x128xf32>
    %14 = tpu.matmul %11, %13, %cst_17 {dimension_numbers = #tpu.dot_dimension_numbers<[1], [0], [0], [1], [0, 0, 1, 1], [], []>} : vector<16x128xf32>, vector<128x128xf32>, vector<16x128xf32> -> vector<16x128xf32>
    %15 = arith.addf %10, %14 : vector<16x128xf32>
    %c8_18 = arith.constant 8 : index
    %c0_19 = arith.constant 0 : index
    %16 = vector.load %arg9[%c8_18, %c0_19] : memref<32x128xf32, #tpu.memory_space<vmem>>, vector<16x128xf32>
    %c1 = arith.constant 1 : index
    %c0_20 = arith.constant 0 : index
    %c0_21 = arith.constant 0 : index
    %17 = vector.load %arg2[%c1, %c0_20, %c0_21] : memref<3x128x128xf32, #tpu.memory_space<vmem>>, vector<1x128x128xf32>
    %18 = vector.shape_cast %17 : vector<1x128x128xf32> to vector<128x128xf32>
    %cst_22 = arith.constant dense<0.000000e+00> : vector<16x128xf32>
    %19 = tpu.matmul %16, %18, %cst_22 {dimension_numbers = #tpu.dot_dimension_numbers<[1], [0], [0], [1], [0, 0, 1, 1], [], []>} : vector<16x128xf32>, vector<128x128xf32>, vector<16x128xf32> -> vector<16x128xf32>
    %20 = arith.addf %15, %19 : vector<16x128xf32>
    %c9 = arith.constant 9 : index
    %c0_23 = arith.constant 0 : index
    %21 = vector.load %arg9[%c9, %c0_23] : memref<32x128xf32, #tpu.memory_space<vmem>>, vector<16x128xf32>
    %c2 = arith.constant 2 : index
    %c0_24 = arith.constant 0 : index
    %c0_25 = arith.constant 0 : index
    %22 = vector.load %arg2[%c2, %c0_24, %c0_25] : memref<3x128x128xf32, #tpu.memory_space<vmem>>, vector<1x128x128xf32>
    %23 = vector.shape_cast %22 : vector<1x128x128xf32> to vector<128x128xf32>
    %cst_26 = arith.constant dense<0.000000e+00> : vector<16x128xf32>
    %24 = tpu.matmul %21, %23, %cst_26 {dimension_numbers = #tpu.dot_dimension_numbers<[1], [0], [0], [1], [0, 0, 1, 1], [], []>} : vector<16x128xf32>, vector<128x128xf32>, vector<16x128xf32> -> vector<16x128xf32>
    %25 = arith.addf %20, %24 : vector<16x128xf32>
    %c0_27 = arith.constant 0 : index
    %c0_28 = arith.constant 0 : index
    %26 = vector.load %arg4[%c0_27, %c0_28] : memref<1x128xf32, #tpu.memory_space<vmem>>, vector<1x128xf32>
    %27 = vector.broadcast %26 : vector<1x128xf32> to vector<16x128xf32>
    %28 = arith.mulf %25, %27 : vector<16x128xf32>
    %c0_29 = arith.constant 0 : index
    %c0_30 = arith.constant 0 : index
    %29 = vector.load %arg5[%c0_29, %c0_30] : memref<1x128xf32, #tpu.memory_space<vmem>>, vector<1x128xf32>
    %30 = vector.broadcast %29 : vector<1x128xf32> to vector<16x128xf32>
    %31 = arith.addf %28, %30 : vector<16x128xf32>
    %cst_31 = arith.constant 0.000000e+00 : f32
    %32 = vector.broadcast %cst_31 : f32 to vector<16x128xf32>
    %33 = arith.maximumf %31, %32 : vector<16x128xf32>
    %c8_32 = arith.constant 8 : index
    %c0_33 = arith.constant 0 : index
    %34 = vector.load %arg10[%c8_32, %c0_33] : memref<32x128xf32, #tpu.memory_space<vmem>>, vector<16x128xf32>
    tpu.vector_store %arg10[%c8_32, %c0_33], %33 {strides = array<i32>} : memref<32x128xf32, #tpu.memory_space<vmem>>, vector<16x128xf32>,
    %cst_34 = arith.constant 0.000000e+00 : f32
    %35 = vector.broadcast %cst_34 : f32 to vector<16x128xf32>
    %c7_35 = arith.constant 7 : index
    %c0_36 = arith.constant 0 : index
    %36 = vector.load %arg10[%c7_35, %c0_36] : memref<32x128xf32, #tpu.memory_space<vmem>>, vector<16x128xf32>
    %c0_37 = arith.constant 0 : index
    %c0_38 = arith.constant 0 : index
    %c0_39 = arith.constant 0 : index
    %37 = vector.load %arg3[%c0_37, %c0_38, %c0_39] : memref<3x128x128xf32, #tpu.memory_space<vmem>>, vector<1x128x128xf32>
    %38 = vector.shape_cast %37 : vector<1x128x128xf32> to vector<128x128xf32>
    %cst_40 = arith.constant dense<0.000000e+00> : vector<16x128xf32>
    %39 = tpu.matmul %36, %38, %cst_40 {dimension_numbers = #tpu.dot_dimension_numbers<[1], [0], [0], [1], [0, 0, 1, 1], [], []>} : vector<16x128xf32>, vector<128x128xf32>, vector<16x128xf32> -> vector<16x128xf32>
    %40 = arith.addf %35, %39 : vector<16x128xf32>
    %c8_41 = arith.constant 8 : index
    %c0_42 = arith.constant 0 : index
    %41 = vector.load %arg10[%c8_41, %c0_42] : memref<32x128xf32, #tpu.memory_space<vmem>>, vector<16x128xf32>
    %c1_43 = arith.constant 1 : index
    %c0_44 = arith.constant 0 : index
    %c0_45 = arith.constant 0 : index
    %42 = vector.load %arg3[%c1_43, %c0_44, %c0_45] : memref<3x128x128xf32, #tpu.memory_space<vmem>>, vector<1x128x128xf32>
    %43 = vector.shape_cast %42 : vector<1x128x128xf32> to vector<128x128xf32>
    %cst_46 = arith.constant dense<0.000000e+00> : vector<16x128xf32>
    %44 = tpu.matmul %41, %43, %cst_46 {dimension_numbers = #tpu.dot_dimension_numbers<[1], [0], [0], [1], [0, 0, 1, 1], [], []>} : vector<16x128xf32>, vector<128x128xf32>, vector<16x128xf32> -> vector<16x128xf32>
    %45 = arith.addf %40, %44 : vector<16x128xf32>
    %c9_47 = arith.constant 9 : index
    %c0_48 = arith.constant 0 : index
    %46 = vector.load %arg10[%c9_47, %c0_48] : memref<32x128xf32, #tpu.memory_space<vmem>>, vector<16x128xf32>
    %c2_49 = arith.constant 2 : index
    %c0_50 = arith.constant 0 : index
    %c0_51 = arith.constant 0 : index
    %47 = vector.load %arg3[%c2_49, %c0_50, %c0_51] : memref<3x128x128xf32, #tpu.memory_space<vmem>>, vector<1x128x128xf32>
    %48 = vector.shape_cast %47 : vector<1x128x128xf32> to vector<128x128xf32>
    %cst_52 = arith.constant dense<0.000000e+00> : vector<16x128xf32>
    %49 = tpu.matmul %46, %48, %cst_52 {dimension_numbers = #tpu.dot_dimension_numbers<[1], [0], [0], [1], [0, 0, 1, 1], [], []>} : vector<16x128xf32>, vector<128x128xf32>, vector<16x128xf32> -> vector<16x128xf32>
    %50 = arith.addf %45, %49 : vector<16x128xf32>
    %c0_53 = arith.constant 0 : index
    %c0_54 = arith.constant 0 : index
    %51 = vector.load %arg6[%c0_53, %c0_54] : memref<1x128xf32, #tpu.memory_space<vmem>>, vector<1x128xf32>
    %52 = vector.broadcast %51 : vector<1x128xf32> to vector<16x128xf32>
    %53 = arith.mulf %50, %52 : vector<16x128xf32>
    %c0_55 = arith.constant 0 : index
    %c0_56 = arith.constant 0 : index
    %54 = vector.load %arg7[%c0_55, %c0_56] : memref<1x128xf32, #tpu.memory_space<vmem>>, vector<1x128xf32>
    %55 = vector.broadcast %54 : vector<1x128xf32> to vector<16x128xf32>
    %56 = arith.addf %53, %55 : vector<16x128xf32>
    %57 = arith.addf %56, %0 : vector<16x128xf32>
    %cst_57 = arith.constant 0.000000e+00 : f32
    %58 = vector.broadcast %cst_57 : f32 to vector<16x128xf32>
    %59 = arith.maximumf %57, %58 : vector<16x128xf32>
    %c0_58 = arith.constant 0 : index
    %c0_59 = arith.constant 0 : index
    %60 = vector.load %arg8[%c0_58, %c0_59] : memref<16x128xf32, #tpu.memory_space<vmem>>, vector<16x128xf32>
    tpu.vector_store %arg8[%c0_58, %c0_59], %59 {strides = array<i32>} : memref<16x128xf32, #tpu.memory_space<vmem>>, vector<16x128xf32>,
    return
  }
  func.func @transform_0(%arg0: i32) -> (i32, i32) {
    %c0_i32 = arith.constant 0 : i32
    %c0_i32_0 = arith.constant 0 : i32
    return %c0_i32, %arg0 : i32, i32
  }
  func.func @transform_1(%arg0: i32) -> (i32, i32, i32) {
    %c0_i32 = arith.constant 0 : i32
    %c0_i32_0 = arith.constant 0 : i32
    %c0_i32_1 = arith.constant 0 : i32
    %c0_i32_2 = arith.constant 0 : i32
    return %c0_i32, %c0_i32_0, %c0_i32_1 : i32, i32, i32
  }
  func.func @transform_2(%arg0: i32) -> (i32, i32, i32) {
    %c0_i32 = arith.constant 0 : i32
    %c0_i32_0 = arith.constant 0 : i32
    %c0_i32_1 = arith.constant 0 : i32
    %c0_i32_2 = arith.constant 0 : i32
    return %c0_i32, %c0_i32_0, %c0_i32_1 : i32, i32, i32
  }
  func.func @transform_3(%arg0: i32) -> (i32, i32) {
    %c0_i32 = arith.constant 0 : i32
    %c0_i32_0 = arith.constant 0 : i32
    %c0_i32_1 = arith.constant 0 : i32
    return %c0_i32, %c0_i32_0 : i32, i32
  }
  func.func @transform_4(%arg0: i32) -> (i32, i32) {
    %c0_i32 = arith.constant 0 : i32
    %c0_i32_0 = arith.constant 0 : i32
    %c0_i32_1 = arith.constant 0 : i32
    return %c0_i32, %c0_i32_0 : i32, i32
  }
  func.func @transform_5(%arg0: i32) -> (i32, i32) {
    %c0_i32 = arith.constant 0 : i32
    %c0_i32_0 = arith.constant 0 : i32
    %c0_i32_1 = arith.constant 0 : i32
    return %c0_i32, %c0_i32_0 : i32, i32
  }
  func.func @transform_6(%arg0: i32) -> (i32, i32) {
    %c0_i32 = arith.constant 0 : i32
    %c0_i32_0 = arith.constant 0 : i32
    %c0_i32_1 = arith.constant 0 : i32
    return %c0_i32, %c0_i32_0 : i32, i32
  }
  func.func @transform_7(%arg0: i32) -> (i32, i32) {
    %c0_i32 = arith.constant 0 : i32
    %c0_i32_0 = arith.constant 0 : i32
    return %c0_i32, %arg0 : i32, i32
  }
}

module attributes {stable_mosaic.version = 11 : i64} {
  func.func @kernel(%arg0: i32, %arg1: memref<16x128xf32, #tpu.memory_space<vmem>>, %arg2: memref<3x128x128xf32, #tpu.memory_space<vmem>>, %arg3: memref<3x128x128xf32, #tpu.memory_space<vmem>>, %arg4: memref<1x128xf32, #tpu.memory_space<vmem>>, %arg5: memref<1x128xf32, #tpu.memory_space<vmem>>, %arg6: memref<1x128xf32, #tpu.memory_space<vmem>>, %arg7: memref<1x128xf32, #tpu.memory_space<vmem>>, %arg8: memref<16x128xf32, #tpu.memory_space<vmem>>, %arg9: memref<32x128xf32, #tpu.memory_space<vmem>>, %arg10: memref<32x128xf32, #tpu.memory_space<vmem>>) attributes {dimension_semantics = [#tpu.dimension_semantics<parallel>], iteration_bounds = array<i64: 1>, scalar_prefetch = 0 : i64, scratch_operands = 2 : i64, tpu.core_type = #tpu.core_type<tc>, window_params = [{transform_indices = @transform_0, window_bounds = array<i64: 16, 128>}, {pipeline_mode = #tpu.pipeline_mode<synchronous>, transform_indices = @transform_1, window_bounds = array<i64: 3, 128, 128>}, {pipeline_mode = #tpu.pipeline_mode<synchronous>, transform_indices = @transform_2, window_bounds = array<i64: 3, 128, 128>}, {pipeline_mode = #tpu.pipeline_mode<synchronous>, transform_indices = @transform_3, window_bounds = array<i64: 1, 128>}, {pipeline_mode = #tpu.pipeline_mode<synchronous>, transform_indices = @transform_4, window_bounds = array<i64: 1, 128>}, {pipeline_mode = #tpu.pipeline_mode<synchronous>, transform_indices = @transform_5, window_bounds = array<i64: 1, 128>}, {pipeline_mode = #tpu.pipeline_mode<synchronous>, transform_indices = @transform_6, window_bounds = array<i64: 1, 128>}, {transform_indices = @transform_7, window_bounds = array<i64: 16, 128>}]} {
    %c0 = arith.constant 0 : index
    %c0_0 = arith.constant 0 : index
    %0 = vector.load %arg1[%c0, %c0_0] : memref<16x128xf32, #tpu.memory_space<vmem>>, vector<16x128xf32>
    %cst = arith.constant 0.000000e+00 : f32
    %1 = vector.broadcast %cst : f32 to vector<1x128xf32>
    %c7 = arith.constant 7 : index
    %c0_1 = arith.constant 0 : index
    %2 = vector.load %arg9[%c7, %c0_1] : memref<32x128xf32, #tpu.memory_space<vmem>>, vector<1x128xf32>
    tpu.vector_store %arg9[%c7, %c0_1], %1 {strides = array<i32>} : memref<32x128xf32, #tpu.memory_space<vmem>>, vector<1x128xf32>,
    %cst_2 = arith.constant 0.000000e+00 : f32
    %3 = vector.broadcast %cst_2 : f32 to vector<1x128xf32>
    %c24 = arith.constant 24 : index
    %c0_3 = arith.constant 0 : index
    %4 = vector.load %arg9[%c24, %c0_3] : memref<32x128xf32, #tpu.memory_space<vmem>>, vector<1x128xf32>
    tpu.vector_store %arg9[%c24, %c0_3], %3 {strides = array<i32>} : memref<32x128xf32, #tpu.memory_space<vmem>>, vector<1x128xf32>,
    %cst_4 = arith.constant 0.000000e+00 : f32
    %5 = vector.broadcast %cst_4 : f32 to vector<1x128xf32>
    %c7_5 = arith.constant 7 : index
    %c0_6 = arith.constant 0 : index
    %6 = vector.load %arg10[%c7_5, %c0_6] : memref<32x128xf32, #tpu.memory_space<vmem>>, vector<1x128xf32>
    tpu.vector_store %arg10[%c7_5, %c0_6], %5 {strides = array<i32>} : memref<32x128xf32, #tpu.memory_space<vmem>>, vector<1x128xf32>,
    %cst_7 = arith.constant 0.000000e+00 : f32
    %7 = vector.broadcast %cst_7 : f32 to vector<1x128xf32>
    %c24_8 = arith.constant 24 : index
    %c0_9 = arith.constant 0 : index
    %8 = vector.load %arg10[%c24_8, %c0_9] : memref<32x128xf32, #tpu.memory_space<vmem>>, vector<1x128xf32>
    tpu.vector_store %arg10[%c24_8, %c0_9], %7 {strides = array<i32>} : memref<32x128xf32, #tpu.memory_space<vmem>>, vector<1x128xf32>,
    %c8 = arith.constant 8 : index
    %c0_10 = arith.constant 0 : index
    %9 = vector.load %arg9[%c8, %c0_10] : memref<32x128xf32, #tpu.memory_space<vmem>>, vector<16x128xf32>
    tpu.vector_store %arg9[%c8, %c0_10], %0 {strides = array<i32>} : memref<32x128xf32, #tpu.memory_space<vmem>>, vector<16x128xf32>,
    %cst_11 = arith.constant 0.000000e+00 : f32
    %10 = vector.broadcast %cst_11 : f32 to vector<16x128xf32>
    %c7_12 = arith.constant 7 : index
    %c0_13 = arith.constant 0 : index
    %11 = vector.load %arg9[%c7_12, %c0_13] : memref<32x128xf32, #tpu.memory_space<vmem>>, vector<16x128xf32>
    %c0_14 = arith.constant 0 : index
    %c0_15 = arith.constant 0 : index
    %c0_16 = arith.constant 0 : index
    %12 = vector.load %arg2[%c0_14, %c0_15, %c0_16] : memref<3x128x128xf32, #tpu.memory_space<vmem>>, vector<1x128x128xf32>
    %13 = vector.shape_cast %12 : vector<1x128x128xf32> to vector<128x128xf32>
    %cst_17 = arith.constant dense<0.000000e+00> : vector<16x128xf32>
    %14 = tpu.matmul %11, %13, %cst_17 {dimension_numbers = #tpu.dot_dimension_numbers<[1], [0], [0], [1], [0, 0, 1, 1], [], []>} : vector<16x128xf32>, vector<128x128xf32>, vector<16x128xf32> -> vector<16x128xf32>
    %15 = arith.addf %10, %14 : vector<16x128xf32>
    %c8_18 = arith.constant 8 : index
    %c0_19 = arith.constant 0 : index
    %16 = vector.load %arg9[%c8_18, %c0_19] : memref<32x128xf32, #tpu.memory_space<vmem>>, vector<16x128xf32>
    %c1 = arith.constant 1 : index
    %c0_20 = arith.constant 0 : index
    %c0_21 = arith.constant 0 : index
    %17 = vector.load %arg2[%c1, %c0_20, %c0_21] : memref<3x128x128xf32, #tpu.memory_space<vmem>>, vector<1x128x128xf32>
    %18 = vector.shape_cast %17 : vector<1x128x128xf32> to vector<128x128xf32>
    %cst_22 = arith.constant dense<0.000000e+00> : vector<16x128xf32>
    %19 = tpu.matmul %16, %18, %cst_22 {dimension_numbers = #tpu.dot_dimension_numbers<[1], [0], [0], [1], [0, 0, 1, 1], [], []>} : vector<16x128xf32>, vector<128x128xf32>, vector<16x128xf32> -> vector<16x128xf32>
    %20 = arith.addf %15, %19 : vector<16x128xf32>
    %c9 = arith.constant 9 : index
    %c0_23 = arith.constant 0 : index
    %21 = vector.load %arg9[%c9, %c0_23] : memref<32x128xf32, #tpu.memory_space<vmem>>, vector<16x128xf32>
    %c2 = arith.constant 2 : index
    %c0_24 = arith.constant 0 : index
    %c0_25 = arith.constant 0 : index
    %22 = vector.load %arg2[%c2, %c0_24, %c0_25] : memref<3x128x128xf32, #tpu.memory_space<vmem>>, vector<1x128x128xf32>
    %23 = vector.shape_cast %22 : vector<1x128x128xf32> to vector<128x128xf32>
    %cst_26 = arith.constant dense<0.000000e+00> : vector<16x128xf32>
    %24 = tpu.matmul %21, %23, %cst_26 {dimension_numbers = #tpu.dot_dimension_numbers<[1], [0], [0], [1], [0, 0, 1, 1], [], []>} : vector<16x128xf32>, vector<128x128xf32>, vector<16x128xf32> -> vector<16x128xf32>
    %25 = arith.addf %20, %24 : vector<16x128xf32>
    %c0_27 = arith.constant 0 : index
    %c0_28 = arith.constant 0 : index
    %26 = vector.load %arg4[%c0_27, %c0_28] : memref<1x128xf32, #tpu.memory_space<vmem>>, vector<1x128xf32>
    %27 = vector.broadcast %26 : vector<1x128xf32> to vector<16x128xf32>
    %28 = arith.mulf %25, %27 : vector<16x128xf32>
    %c0_29 = arith.constant 0 : index
    %c0_30 = arith.constant 0 : index
    %29 = vector.load %arg5[%c0_29, %c0_30] : memref<1x128xf32, #tpu.memory_space<vmem>>, vector<1x128xf32>
    %30 = vector.broadcast %29 : vector<1x128xf32> to vector<16x128xf32>
    %31 = arith.addf %28, %30 : vector<16x128xf32>
    %cst_31 = arith.constant 0.000000e+00 : f32
    %32 = vector.broadcast %cst_31 : f32 to vector<16x128xf32>
    %33 = arith.maximumf %31, %32 : vector<16x128xf32>
    %c8_32 = arith.constant 8 : index
    %c0_33 = arith.constant 0 : index
    %34 = vector.load %arg10[%c8_32, %c0_33] : memref<32x128xf32, #tpu.memory_space<vmem>>, vector<16x128xf32>
    tpu.vector_store %arg10[%c8_32, %c0_33], %33 {strides = array<i32>} : memref<32x128xf32, #tpu.memory_space<vmem>>, vector<16x128xf32>,
    %cst_34 = arith.constant 0.000000e+00 : f32
    %35 = vector.broadcast %cst_34 : f32 to vector<16x128xf32>
    %c7_35 = arith.constant 7 : index
    %c0_36 = arith.constant 0 : index
    %36 = vector.load %arg10[%c7_35, %c0_36] : memref<32x128xf32, #tpu.memory_space<vmem>>, vector<16x128xf32>
    %c0_37 = arith.constant 0 : index
    %c0_38 = arith.constant 0 : index
    %c0_39 = arith.constant 0 : index
    %37 = vector.load %arg3[%c0_37, %c0_38, %c0_39] : memref<3x128x128xf32, #tpu.memory_space<vmem>>, vector<1x128x128xf32>
    %38 = vector.shape_cast %37 : vector<1x128x128xf32> to vector<128x128xf32>
    %cst_40 = arith.constant dense<0.000000e+00> : vector<16x128xf32>
    %39 = tpu.matmul %36, %38, %cst_40 {dimension_numbers = #tpu.dot_dimension_numbers<[1], [0], [0], [1], [0, 0, 1, 1], [], []>} : vector<16x128xf32>, vector<128x128xf32>, vector<16x128xf32> -> vector<16x128xf32>
    %40 = arith.addf %35, %39 : vector<16x128xf32>
    %c8_41 = arith.constant 8 : index
    %c0_42 = arith.constant 0 : index
    %41 = vector.load %arg10[%c8_41, %c0_42] : memref<32x128xf32, #tpu.memory_space<vmem>>, vector<16x128xf32>
    %c1_43 = arith.constant 1 : index
    %c0_44 = arith.constant 0 : index
    %c0_45 = arith.constant 0 : index
    %42 = vector.load %arg3[%c1_43, %c0_44, %c0_45] : memref<3x128x128xf32, #tpu.memory_space<vmem>>, vector<1x128x128xf32>
    %43 = vector.shape_cast %42 : vector<1x128x128xf32> to vector<128x128xf32>
    %cst_46 = arith.constant dense<0.000000e+00> : vector<16x128xf32>
    %44 = tpu.matmul %41, %43, %cst_46 {dimension_numbers = #tpu.dot_dimension_numbers<[1], [0], [0], [1], [0, 0, 1, 1], [], []>} : vector<16x128xf32>, vector<128x128xf32>, vector<16x128xf32> -> vector<16x128xf32>
    %45 = arith.addf %40, %44 : vector<16x128xf32>
    %c9_47 = arith.constant 9 : index
    %c0_48 = arith.constant 0 : index
    %46 = vector.load %arg10[%c9_47, %c0_48] : memref<32x128xf32, #tpu.memory_space<vmem>>, vector<16x128xf32>
    %c2_49 = arith.constant 2 : index
    %c0_50 = arith.constant 0 : index
    %c0_51 = arith.constant 0 : index
    %47 = vector.load %arg3[%c2_49, %c0_50, %c0_51] : memref<3x128x128xf32, #tpu.memory_space<vmem>>, vector<1x128x128xf32>
    %48 = vector.shape_cast %47 : vector<1x128x128xf32> to vector<128x128xf32>
    %cst_52 = arith.constant dense<0.000000e+00> : vector<16x128xf32>
    %49 = tpu.matmul %46, %48, %cst_52 {dimension_numbers = #tpu.dot_dimension_numbers<[1], [0], [0], [1], [0, 0, 1, 1], [], []>} : vector<16x128xf32>, vector<128x128xf32>, vector<16x128xf32> -> vector<16x128xf32>
    %50 = arith.addf %45, %49 : vector<16x128xf32>
    %c0_53 = arith.constant 0 : index
    %c0_54 = arith.constant 0 : index
    %51 = vector.load %arg6[%c0_53, %c0_54] : memref<1x128xf32, #tpu.memory_space<vmem>>, vector<1x128xf32>
    %52 = vector.broadcast %51 : vector<1x128xf32> to vector<16x128xf32>
    %53 = arith.mulf %50, %52 : vector<16x128xf32>
    %c0_55 = arith.constant 0 : index
    %c0_56 = arith.constant 0 : index
    %54 = vector.load %arg7[%c0_55, %c0_56] : memref<1x128xf32, #tpu.memory_space<vmem>>, vector<1x128xf32>
    %55 = vector.broadcast %54 : vector<1x128xf32> to vector<16x128xf32>
    %56 = arith.addf %53, %55 : vector<16x128xf32>
    %57 = arith.addf %56, %0 : vector<16x128xf32>
    %cst_57 = arith.constant 0.000000e+00 : f32
    %58 = vector.broadcast %cst_57 : f32 to vector<16x128xf32>
    %59 = arith.maximumf %57, %58 : vector<16x128xf32>
    %c0_58 = arith.constant 0 : index
    %c0_59 = arith.constant 0 : index
    %60 = vector.load %arg8[%c0_58, %c0_59] : memref<16x128xf32, #tpu.memory_space<vmem>>, vector<16x128xf32>
    tpu.vector_store %arg8[%c0_58, %c0_59], %59 {strides = array<i32>} : memref<16x128xf32, #tpu.memory_space<vmem>>, vector<16x128xf32>,
    return
  }
  func.func @transform_0(%arg0: i32) -> (i32, i32) {
    %c0_i32 = arith.constant 0 : i32
    %c0_i32_0 = arith.constant 0 : i32
    return %c0_i32, %arg0 : i32, i32
  }
  func.func @transform_1(%arg0: i32) -> (i32, i32, i32) {
    %c0_i32 = arith.constant 0 : i32
    %c0_i32_0 = arith.constant 0 : i32
    %c0_i32_1 = arith.constant 0 : i32
    %c0_i32_2 = arith.constant 0 : i32
    return %c0_i32, %c0_i32_0, %c0_i32_1 : i32, i32, i32
  }
  func.func @transform_2(%arg0: i32) -> (i32, i32, i32) {
    %c0_i32 = arith.constant 0 : i32
    %c0_i32_0 = arith.constant 0 : i32
    %c0_i32_1 = arith.constant 0 : i32
    %c0_i32_2 = arith.constant 0 : i32
    return %c0_i32, %c0_i32_0, %c0_i32_1 : i32, i32, i32
  }
  func.func @transform_3(%arg0: i32) -> (i32, i32) {
    %c0_i32 = arith.constant 0 : i32
    %c0_i32_0 = arith.constant 0 : i32
    %c0_i32_1 = arith.constant 0 : i32
    return %c0_i32, %c0_i32_0 : i32, i32
  }
  func.func @transform_4(%arg0: i32) -> (i32, i32) {
    %c0_i32 = arith.constant 0 : i32
    %c0_i32_0 = arith.constant 0 : i32
    %c0_i32_1 = arith.constant 0 : i32
    return %c0_i32, %c0_i32_0 : i32, i32
  }
  func.func @transform_5(%arg0: i32) -> (i32, i32) {
    %c0_i32 = arith.constant 0 : i32
    %c0_i32_0 = arith.constant 0 : i32
    %c0_i32_1 = arith.constant 0 : i32
    return %c0_i32, %c0_i32_0 : i32, i32
  }
  func.func @transform_6(%arg0: i32) -> (i32, i32) {
    %c0_i32 = arith.constant 0 : i32
    %c0_i32_0 = arith.constant 0 : i32
    %c0_i32_1 = arith.constant 0 : i32
    return %c0_i32, %c0_i32_0 : i32, i32
  }
  func.func @transform_7(%arg0: i32) -> (i32, i32) {
    %c0_i32 = arith.constant 0 : i32
    %c0_i32_0 = arith.constant 0 : i32
    return %c0_i32, %arg0 : i32, i32
  }
}

</mosaic_0001>

<bundles_post_ra>
// kernel: tpu_custom_call.1
= control target key start
LH: loop header
LB: loop body
LE: loop exit
PB: predicated region body
PF: predicated region fallthrough
CT: control target
= control target key end

     0   :  { %12 = vsyncpa [#allocation5], 0  ;;  %s1214_s0 = inlined_call_operand.hbm [shape: f32[16,128], index: 0, kind: input, shape index: {}]   ;;  %s1215_s1 = inlined_call_operand.hbm [shape: f32[3,128,128], index: 1, kind: input, shape index: {}]   ;;  %s1216_s2 = inlined_call_operand.hbm [shape: f32[3,128,128], index: 2, kind: input, shape index: {}]   ;;  %s1217_s3 = inlined_call_operand.vmem [shape: f32[1,128], index: 3, kind: input, shape index: {}]   ;;  %s1218_s4 = inlined_call_operand.vmem [shape: f32[1,128], index: 4, kind: input, shape index: {}]   ;;  %s1219_s5 = inlined_call_operand.vmem [shape: f32[1,128], index: 5, kind: input, shape index: {}]   ;;  %s1220_s6 = inlined_call_operand.vmem [shape: f32[1,128], index: 6, kind: input, shape index: {}]   ;;  %s1221_s7 = inlined_call_operand.hbm [shape: f32[16,128], index: 7, kind: output, shape index: {}]  }
   0x1   :  { %13 = vsyncpa [#allocation8], 0 }
   0x2   :  { %14 = vsyncpa [#allocation6], 0  ;;  %s1121_s24 = smov [#allocation7]   ;;  %s1122_s26 = smov [#allocation4]  }
   0x3   :  { %s32_s25 = sshll.u32 %s1121_s24, 4  ;;  %s20_s27 = sshll.u32 %s1122_s26, 4  ;;  %s33_s25 = int_to_ptr.vmem [resolvable:$true] %s32_s25  ;;  %s21_s27 = int_to_ptr.vmem [resolvable:$true] %s20_s27 }
   0x4   :  { %s1043_s28 = scalar_lea.vmem %s33_s25, 6144  ;;  %p1048_p1 = scmp.lt.s32.totalorder %s33_s25, %s33_s25 }
   0x5   :  { %p1044_p0 = scmp.ne.s32.totalorder %s33_s25, %s1043_s28  ;;  %p1049_p2 = scmp.lt.s32.totalorder %s1043_s28, %s1043_s28 }
   0x7   :  { %p1050_p3 = por %p1049_p2, %p1048_p1 }
   0x9   :  { %p1051_p4 = pnand %p1050_p3, %p1044_p0 }
   0xb   :  { %1054 = shalt.err (!%p1051_p4)
}
   0xc   :  { %s1123_s29 = smov 128   ;;  %s1124_s30 = smov 8  }
   0xd   :  { %38 = dma.hbm_to_vmem [thread:$0]  %s1215_s1, 6144, %s33_s25, [#allocation8], %s1123_s29, %s1123_s29, %s1124_s30  }
   0xe   :  { %s1063_s10 = scalar_lea.vmem %s21_s27, 256  ;;  %p1068_p6 = scmp.lt.s32.totalorder %s21_s27, %s21_s27 }
   0xf   :  { %p1064_p5 = scmp.ne.s32.totalorder %s21_s27, %s1063_s10  ;;  %p1069_p7 = scmp.lt.s32.totalorder %s1063_s10, %s1063_s10 }
  0x11   :  { %p1070_p8 = por %p1069_p7, %p1068_p6 }
  0x13   :  { %p1071_p9 = pnand %p1070_p8, %p1064_p5 }
  0x15   :  { %1074 = shalt.err (!%p1071_p9)
}
  0x16   :  { %26 = dma.hbm_to_vmem [thread:$0]  %s1214_s0, 256, %s21_s27, [#allocation5], %s1123_s29, %s1123_s29, %s1124_s30  }
  0x17   :  { %s1125_s13 = smov [#allocation9]  }
  0x18   :  { %s44_s14 = sshll.u32 %s1125_s13, 4  ;;  %s45_s14 = int_to_ptr.vmem [resolvable:$true] %s44_s14 }
  0x19   :  { %s1083_s15 = scalar_lea.vmem %s45_s14, 6144  ;;  %p1088_p11 = scmp.lt.s32.totalorder %s45_s14, %s45_s14 }
  0x1a   :  { %p1084_p10 = scmp.ne.s32.totalorder %s45_s14, %s1083_s15  ;;  %p1089_p12 = scmp.lt.s32.totalorder %s1083_s15, %s1083_s15 }
  0x1c   :  { %p1090_p13 = por %p1089_p12, %p1088_p11 }
  0x1e   :  { %p1091_p0 = pnand %p1090_p13, %p1084_p10 }
  0x20   :  { %1094 = shalt.err (!%p1091_p0)
}
  0x21   :  { %50 = dma.hbm_to_vmem [thread:$0]  %s1216_s2, 6144, %s45_s14, [#allocation8], %s1123_s29, %s1123_s29, %s1124_s30  }
  0x22   :  { %1115 = dma.done.wait [#allocation5], 256  }
  0x23   :  { %1116 = vsyncadd [#allocation5], 4294967040 }
  0x24   :  { %1117 = dma.done.wait [#allocation8], 12288  }
  0x25   :  { %1118 = vsyncadd [#allocation8], 4294955008  ;;  %v1126_v0 = vmov 0.0   ;;  %v112_v1 = vld [vmem:[#allocation7 + $0xf8] sm:$0xff]  ;;  %v111_v3 = vld [vmem:[#allocation7 + $0xf0] sm:$0xff]  ;;  %s1127_s21 = smov [#allocation10]  }
  0x26   :  { %70 = vst [vmem:[#allocation2 + $0x7] sm:$0x1] %v1126_v0  ;;  %71 = vst [vmem:[#allocation2 + $0x18] sm:$0x1] %v1126_v0  ;;  %v93_v2 = vld [vmem:[#allocation7 + $0x78] sm:$0xff]  ;;  %818 = vmatprep.subr.mxu0 %v112_v1  ;;  %v92_v4 = vld [vmem:[#allocation7 + $0x70] sm:$0xff] }
  0x27   :  { %72 = vst [vmem:[#allocation3 + $0x7] sm:$0x1] %v1126_v0  ;;  %73 = vst [vmem:[#allocation3 + $0x18] sm:$0x1] %v1126_v0  ;;  %853 = vmatprep.subr.mxu1 %v93_v2  ;;  %819 = vmatpush3.msra.mxu0 %v112_v1  ;;  %v110_v5 = vld [vmem:[#allocation7 + $0xe8] sm:$0xff]  ;;  %v109_v7 = vld [vmem:[#allocation7 + $0xe0] sm:$0xff] }
  0x28   :  { %854 = vmatpush3.msra.mxu1 %v93_v2  ;;  %v91_v6 = vld [vmem:[#allocation7 + $0x68] sm:$0xff]  ;;  %820 = vmatprep.subr.mxu0 %v111_v3  ;;  %v90_v8 = vld [vmem:[#allocation7 + $0x60] sm:$0xff]  ;;  %v108_v9 = vld [vmem:[#allocation7 + $0xd8] sm:$0xff]  ;;  %s693_s22 = sshll.u32 %s1127_s21, 4  ;;  %s694_s22 = int_to_ptr.vmem [resolvable:$true] %s693_s22 }
  0x29   :  { %855 = vmatprep.subr.mxu1 %v92_v4  ;;  %821 = vmatpush3.msra.mxu0 %v111_v3  ;;  %v89_v10 = vld [vmem:[#allocation7 + $0x58] sm:$0xff]  ;;  %v107_v11 = vld [vmem:[#allocation7 + $0xd0] sm:$0xff]  ;;  %v106_v13 = vld [vmem:[#allocation7 + $0xc8] sm:$0xff]  ;;  %p1100_p2 = scmp.lt.s32.totalorder %s694_s22, %s694_s22 }
  0x2a   :  { %856 = vmatpush3.msra.mxu1 %v92_v4  ;;  %822 = vmatprep.subr.mxu0 %v110_v5  ;;  %v88_v12 = vld [vmem:[#allocation7 + $0x50] sm:$0xff]  ;;  %v87_v14 = vld [vmem:[#allocation7 + $0x48] sm:$0xff]  ;;  %v1189_v16 = vld [vmem:[#allocation4 + $0x8] sm:$0xff] }
  0x2b   :  { %857 = vmatprep.subr.mxu1 %v91_v6  ;;  %823 = vmatpush3.msra.mxu0 %v110_v5  ;;  %v1186_v15 = vld [vmem:[#allocation4] sm:$0xff]  ;;  %v105_v17 = vld [vmem:[#allocation7 + $0xc0] sm:$0xff]  ;;  %75 = vst [vmem:[#allocation2 + $0x10] sm:$0xff] %v1189_v16  ;;  %v104_v19 = vld [vmem:[#allocation7 + $0xb8] sm:$0xff] }
  0x2c   :  { %858 = vmatpush3.msra.mxu1 %v91_v6  ;;  %824 = vmatprep.subr.mxu0 %v109_v7  ;;  %74 = vst [vmem:[#allocation2 + $0x8] sm:$0xff] %v1186_v15  ;;  %v86_v18 = vld [vmem:[#allocation7 + $0x40] sm:$0xff]  ;;  %v85_v20 = vld [vmem:[#allocation7 + $0x38] sm:$0xff]  ;;  %v103_v21 = vld [vmem:[#allocation7 + $0xb0] sm:$0xff] }
  0x2d   :  { %859 = vmatprep.subr.mxu1 %v90_v8  ;;  %825 = vmatpush3.msra.mxu0 %v109_v7  ;;  %v84_v22 = vld [vmem:[#allocation7 + $0x30] sm:$0xff]  ;;  %v102_v23 = vld [vmem:[#allocation7 + $0xa8] sm:$0xff]  ;;  %v101_v25 = vld [vmem:[#allocation7 + $0xa0] sm:$0xff] }
  0x2e   :  { %860 = vmatpush3.msra.mxu1 %v90_v8  ;;  %826 = vmatprep.subr.mxu0 %v108_v9  ;;  %v83_v24 = vld [vmem:[#allocation7 + $0x28] sm:$0xff]  ;;  %v82_v26 = vld [vmem:[#allocation7 + $0x20] sm:$0xff]  ;;  %v100_v27 = vld [vmem:[#allocation7 + $0x98] sm:$0xff] }
  0x2f   :  { %861 = vmatprep.subr.mxu1 %v89_v10  ;;  %827 = vmatpush3.msra.mxu0 %v108_v9  ;;  %v81_v28 = vld [vmem:[#allocation7 + $0x18] sm:$0xff]  ;;  %v99_v29 = vld [vmem:[#allocation7 + $0x90] sm:$0xff]  ;;  %v98_v31 = vld [vmem:[#allocation7 + $0x88] sm:$0xff] }
  0x30   :  { %862 = vmatpush3.msra.mxu1 %v89_v10  ;;  %828 = vmatprep.subr.mxu0 %v107_v11  ;;  %v80_v30 = vld [vmem:[#allocation7 + $0x10] sm:$0xff]  ;;  %v79_v32 = vld [vmem:[#allocation7 + $0x8] sm:$0xff]  ;;  %v97_v33 = vld [vmem:[#allocation7 + $0x80] sm:$0xff] }
  0x31   :  { %863 = vmatprep.subr.mxu1 %v88_v12  ;;  %829 = vmatpush3.msra.mxu0 %v107_v11  ;;  %v78_v34 = vld [vmem:[#allocation7] sm:$0xff]  ;;  %v281_v37 = vld [vmem:[#allocation7 + $0x178] sm:$0xff]  ;;  %v280_v39 = vld [vmem:[#allocation7 + $0x170] sm:$0xff] }
  0x32   :  { %864 = vmatpush3.msra.mxu1 %v88_v12  ;;  %830 = vmatprep.subr.mxu0 %v106_v13  ;;  %v279_v40 = vld [vmem:[#allocation7 + $0x168] sm:$0xff]  ;;  %v278_v41 = vld [vmem:[#allocation7 + $0x160] sm:$0xff]  ;;  %v277_v42 = vld [vmem:[#allocation7 + $0x158] sm:$0xff] }
  0x33   :  { %865 = vmatprep.subr.mxu1 %v87_v14  ;;  %831 = vmatpush3.msra.mxu0 %v106_v13  ;;  %v76_v35 = vld [vmem:[#allocation2 + $0x7] sm:$0xff]  ;;  %v77_v36 = vld [vmem:[#allocation2 + $0xf] sm:$0xff]  ;;  %v275_v44 = vld [vmem:[#allocation7 + $0x148] sm:$0xff] }
  0x34   :  { %866 = vmatpush3.msra.mxu1 %v87_v14  ;;  %832 = vmatprep.subr.mxu0 %v105_v17  ;;  %v263_v38 = vld [vmem:[#allocation2 + $0x9] sm:$0xff]  ;;  %v276_v43 = vld [vmem:[#allocation7 + $0x150] sm:$0xff]  ;;  %v271_v48 = vld [vmem:[#allocation7 + $0x128] sm:$0xff] }
  0x35   :  { %867 = vmatprep.subr.mxu1 %v86_v18  ;;  %833 = vmatpush3.msra.mxu0 %v105_v17  ;;  %v274_v45 = vld [vmem:[#allocation7 + $0x140] sm:$0xff]  ;;  %v273_v46 = vld [vmem:[#allocation7 + $0x138] sm:$0xff]  ;;  %v272_v47 = vld [vmem:[#allocation7 + $0x130] sm:$0xff] }
  0x36   :  { %868 = vmatpush3.msra.mxu1 %v86_v18  ;;  %834 = vmatprep.subr.mxu0 %v104_v19  ;;  %v270_v49 = vld [vmem:[#allocation7 + $0x120] sm:$0xff]  ;;  %v269_v50 = vld [vmem:[#allocation7 + $0x118] sm:$0xff]  ;;  %v268_v51 = vld [vmem:[#allocation7 + $0x110] sm:$0xff] }
  0x37   :  { %869 = vmatprep.subr.mxu1 %v85_v20  ;;  %835 = vmatpush3.msra.mxu0 %v104_v19  ;;  %v267_v52 = vld [vmem:[#allocation7 + $0x108] sm:$0xff]  ;;  %v266_v53 = vld [vmem:[#allocation7 + $0x100] sm:$0xff]  ;;  %v417_v55 = vld [vmem:[#allocation9 + $0xf8] sm:$0xff] }
  0x38   :  { %870 = vmatpush3.msra.mxu1 %v85_v20  ;;  %836 = vmatprep.subr.mxu0 %v103_v21  ;;  %v264_v54 = vld [vmem:[#allocation2 + $0x11] sm:$0xff]  ;;  %v398_v56 = vld [vmem:[#allocation9 + $0x78] sm:$0xff]  ;;  %v416_v57 = vld [vmem:[#allocation9 + $0xf0] sm:$0xff] }
  0x39   :  { %871 = vmatprep.subr.mxu1 %v84_v22  ;;  %837 = vmatpush3.msra.mxu0 %v103_v21  ;;  %v397_v58 = vld [vmem:[#allocation9 + $0x70] sm:$0xff]  ;;  %v415_v59 = vld [vmem:[#allocation9 + $0xe8] sm:$0xff]  ;;  %v414_v61 = vld [vmem:[#allocation9 + $0xe0] sm:$0xff] }
  0x3a   :  { %872 = vmatpush3.msra.mxu1 %v84_v22  ;;  %838 = vmatprep.subr.mxu0 %v102_v23  ;;  %v396_v60 = vld [vmem:[#allocation9 + $0x68] sm:$0xff]  ;;  %v395_v62 = vld [vmem:[#allocation9 + $0x60] sm:$0xff]  ;;  %v413_v63 = vld [vmem:[#allocation9 + $0xd8] sm:$0xff] }
  0x3b   :  { %873 = vmatprep.subr.mxu1 %v83_v24  ;;  %839 = vmatpush3.msra.mxu0 %v102_v23  ;;  %v394_v0 = vld [vmem:[#allocation9 + $0x58] sm:$0xff]  ;;  %v412_v1 = vld [vmem:[#allocation9 + $0xd0] sm:$0xff]  ;;  %v411_v3 = vld [vmem:[#allocation9 + $0xc8] sm:$0xff] }
  0x3c   :  { %874 = vmatpush3.msra.mxu1 %v83_v24  ;;  %840 = vmatprep.subr.mxu0 %v101_v25  ;;  %v393_v2 = vld [vmem:[#allocation9 + $0x50] sm:$0xff]  ;;  %v410_v4 = vld [vmem:[#allocation9 + $0xc0] sm:$0xff]  ;;  %v409_v5 = vld [vmem:[#allocation9 + $0xb8] sm:$0xff] }
  0x3d   :  { %875 = vmatprep.subr.mxu1 %v82_v26  ;;  %841 = vmatpush3.msra.mxu0 %v101_v25  ;;  %v408_v6 = vld [vmem:[#allocation9 + $0xb0] sm:$0xff]  ;;  %v407_v7 = vld [vmem:[#allocation9 + $0xa8] sm:$0xff]  ;;  %v406_v9 = vld [vmem:[#allocation9 + $0xa0] sm:$0xff] }
  0x3e   :  { %876 = vmatpush3.msra.mxu1 %v82_v26  ;;  %842 = vmatprep.subr.mxu0 %v100_v27  ;;  %v392_v8 = vld [vmem:[#allocation9 + $0x48] sm:$0xff]  ;;  %v391_v10 = vld [vmem:[#allocation9 + $0x40] sm:$0xff]  ;;  %v405_v11 = vld [vmem:[#allocation9 + $0x98] sm:$0xff] }
  0x3f   :  { %877 = vmatprep.subr.mxu1 %v81_v28  ;;  %843 = vmatpush3.msra.mxu0 %v100_v27  ;;  %v390_v12 = vld [vmem:[#allocation9 + $0x38] sm:$0xff]  ;;  %v404_v13 = vld [vmem:[#allocation9 + $0x90] sm:$0xff]  ;;  %v403_v17 = vld [vmem:[#allocation9 + $0x88] sm:$0xff] }
  0x40   :  { %878 = vmatpush3.msra.mxu1 %v81_v28  ;;  %844 = vmatprep.subr.mxu0 %v99_v29  ;;  %v389_v14 = vld [vmem:[#allocation9 + $0x30] sm:$0xff]  ;;  %v388_v18 = vld [vmem:[#allocation9 + $0x28] sm:$0xff]  ;;  %v402_v19 = vld [vmem:[#allocation9 + $0x80] sm:$0xff] }
  0x41   :  { %879 = vmatprep.subr.mxu1 %v80_v30  ;;  %845 = vmatpush3.msra.mxu0 %v99_v29  ;;  %v387_v20 = vld [vmem:[#allocation9 + $0x20] sm:$0xff]  ;;  %v586_v21 = vld [vmem:[#allocation9 + $0x178] sm:$0xff]  ;;  %v385_v23 = vld [vmem:[#allocation9 + $0x10] sm:$0xff] }
  0x42   :  { %880 = vmatpush3.msra.mxu1 %v80_v30  ;;  %846 = vmatprep.subr.mxu0 %v98_v31  ;;  %v386_v22 = vld [vmem:[#allocation9 + $0x18] sm:$0xff]  ;;  %v384_v24 = vld [vmem:[#allocation9 + $0x8] sm:$0xff]  ;;  %v383_v25 = vld [vmem:[#allocation9] sm:$0xff] }
  0x43   :  { %881 = vmatprep.subr.mxu1 %v79_v32  ;;  %847 = vmatpush3.msra.mxu0 %v98_v31 }
  0x44   :  { %882 = vmatpush3.msra.mxu1 %v79_v32  ;;  %848 = vmatprep.subr.mxu0 %v97_v33  ;;  %v706_v32 = vld [vmem:[%s1217_s3] ss:$0 sm:$0xff] }
  0x45   :  { %883 = vmatprep.subr.mxu1 %v78_v34  ;;  %849 = vmatpush3.msra.mxu0 %v97_v33 }
  0x46   :  { %850 = vmatprep.mubr.f32.mxu0 %v1186_v15  ;;  %884 = vmatpush3.msra.mxu1 %v78_v34 }
  0x47   :  { %885 = vmatprep.mubr.f32.mxu1 %v76_v35  ;;  %851 = vmatmul.mubr.f32.vlgmr.msra.gmra.mxu0 %v1189_v16  ;;  %v707_v35 = vld [vmem:[%s1218_s4] ss:$0 sm:$0xff] }
  0x48   :  { %886 = vmatmul.mubr.f32.vlgmr.msra.gmra.mxu1 %v77_v36  ;;  %888 = vmatprep.subr.mxu0 %v281_v37 }
  0x49   :  { %920 = vmatprep.mubr.f32.mxu0 %v263_v38  ;;  %889 = vmatpush3.msra.mxu0 %v281_v37 }
  0x4a   :  { %890 = vmatprep.subr.mxu0 %v280_v39  ;;  %923 = vmatprep.subr.mxu1 %v417_v55 }
  0x4b   :  { %891 = vmatpush3.msra.mxu0 %v280_v39  ;;  %924 = vmatpush3.msra.mxu1 %v417_v55  ;;  %v577_v55 = vld [vmem:[#allocation9 + $0x130] sm:$0xff] }
  0x4c   :  { %892 = vmatprep.subr.mxu0 %v279_v40  ;;  %925 = vmatprep.subr.mxu1 %v416_v57 }
  0x4d   :  { %893 = vmatpush3.msra.mxu0 %v279_v40  ;;  %926 = vmatpush3.msra.mxu1 %v416_v57  ;;  %v575_v57 = vld [vmem:[#allocation9 + $0x120] sm:$0xff] }
  0x4e   :  { %894 = vmatprep.subr.mxu0 %v278_v41  ;;  %927 = vmatprep.subr.mxu1 %v415_v59 }
  0x4f   :  { %895 = vmatpush3.msra.mxu0 %v278_v41  ;;  %928 = vmatpush3.msra.mxu1 %v415_v59  ;;  %v573_v59 = vld [vmem:[#allocation9 + $0x110] sm:$0xff] }
  0x50   :  { %896 = vmatprep.subr.mxu0 %v277_v42  ;;  %929 = vmatprep.subr.mxu1 %v414_v61 }
  0x51   :  { %897 = vmatpush3.msra.mxu0 %v277_v42  ;;  %930 = vmatpush3.msra.mxu1 %v414_v61  ;;  %v571_v61 = vld [vmem:[#allocation9 + $0x100] sm:$0xff] }
  0x52   :  { %898 = vmatprep.subr.mxu0 %v276_v43  ;;  %931 = vmatprep.subr.mxu1 %v413_v63 }
  0x53   :  { %899 = vmatpush3.msra.mxu0 %v276_v43  ;;  %932 = vmatpush3.msra.mxu1 %v413_v63 }
  0x54   :  { %900 = vmatprep.subr.mxu0 %v275_v44  ;;  %933 = vmatprep.subr.mxu1 %v412_v1 }
  0x55   :  { %901 = vmatpush3.msra.mxu0 %v275_v44  ;;  %934 = vmatpush3.msra.mxu1 %v412_v1  ;;  %v585_v44 = vld [vmem:[#allocation9 + $0x170] sm:$0xff] }
  0x56   :  { %902 = vmatprep.subr.mxu0 %v274_v45  ;;  %935 = vmatprep.subr.mxu1 %v411_v3 }
  0x57   :  { %903 = vmatpush3.msra.mxu0 %v274_v45  ;;  %936 = vmatpush3.msra.mxu1 %v411_v3  ;;  %v584_v45 = vld [vmem:[#allocation9 + $0x168] sm:$0xff] }
  0x58   :  { %904 = vmatprep.subr.mxu0 %v273_v46  ;;  %937 = vmatprep.subr.mxu1 %v410_v4 }
  0x59   :  { %905 = vmatpush3.msra.mxu0 %v273_v46  ;;  %938 = vmatpush3.msra.mxu1 %v410_v4  ;;  %v583_v46 = vld [vmem:[#allocation9 + $0x160] sm:$0xff] }
  0x5a   :  { %906 = vmatprep.subr.mxu0 %v272_v47  ;;  %939 = vmatprep.subr.mxu1 %v409_v5 }
  0x5b   :  { %907 = vmatpush3.msra.mxu0 %v272_v47  ;;  %940 = vmatpush3.msra.mxu1 %v409_v5  ;;  %v582_v47 = vld [vmem:[#allocation9 + $0x158] sm:$0xff]  ;;  %v708_v5 = vld [vmem:[%s1219_s5] ss:$0 sm:$0xff]  ;;  %s1095_s5 = scalar_lea.vmem %s694_s22, 256 }
  0x5c   :  { %908 = vmatprep.subr.mxu0 %v271_v48  ;;  %941 = vmatprep.subr.mxu1 %v408_v6  ;;  %p1096_p1 = scmp.ne.s32.totalorder %s694_s22, %s1095_s5  ;;  %p1101_p3 = scmp.lt.s32.totalorder %s1095_s5, %s1095_s5 }
  0x5d   :  { %909 = vmatpush3.msra.mxu0 %v271_v48  ;;  %942 = vmatpush3.msra.mxu1 %v408_v6 }
  0x5e   :  { %910 = vmatprep.subr.mxu0 %v270_v49  ;;  %943 = vmatprep.subr.mxu1 %v407_v7  ;;  %p1102_p4 = por %p1101_p3, %p1100_p2 }
  0x5f   :  { %911 = vmatpush3.msra.mxu0 %v270_v49  ;;  %944 = vmatpush3.msra.mxu1 %v407_v7 }
  0x60   :  { %912 = vmatprep.subr.mxu0 %v269_v50  ;;  %945 = vmatprep.subr.mxu1 %v406_v9  ;;  %p1103_p5 = pnand %p1102_p4, %p1096_p1 }
  0x61   :  { %913 = vmatpush3.msra.mxu0 %v269_v50  ;;  %946 = vmatpush3.msra.mxu1 %v406_v9 }
  0x62   :  { %914 = vmatprep.subr.mxu0 %v268_v51  ;;  %947 = vmatprep.subr.mxu1 %v405_v11 }
  0x63   :  { %915 = vmatpush3.msra.mxu0 %v268_v51  ;;  %948 = vmatpush3.msra.mxu1 %v405_v11  ;;  %v581_v51 = vld [vmem:[#allocation9 + $0x150] sm:$0xff] }
  0x64   :  { %916 = vmatprep.subr.mxu0 %v267_v52  ;;  %949 = vmatprep.subr.mxu1 %v404_v13 }
  0x65   :  { %917 = vmatpush3.msra.mxu0 %v267_v52  ;;  %950 = vmatpush3.msra.mxu1 %v404_v13  ;;  %v580_v52 = vld [vmem:[#allocation9 + $0x148] sm:$0xff] }
  0x66   :  { %918 = vmatprep.subr.mxu0 %v266_v53  ;;  %951 = vmatprep.subr.mxu1 %v403_v17 }
  0x67   :  { %919 = vmatpush3.msra.mxu0 %v266_v53  ;;  %952 = vmatpush3.msra.mxu1 %v403_v17  ;;  %v579_v53 = vld [vmem:[#allocation9 + $0x140] sm:$0xff] }
  0x68   :  { %921 = vmatmul.mubr.f32.vlgmr.msra.gmra.mxu0 %v264_v54  ;;  %958 = vmatprep.subr.mxu0 %v398_v56  ;;  %v578_v54 = vld [vmem:[#allocation9 + $0x138] sm:$0xff] }
  0x69   :  { %959 = vmatpush3.msra.mxu0 %v398_v56  ;;  %953 = vmatprep.subr.mxu1 %v402_v19  ;;  %v576_v56 = vld [vmem:[#allocation9 + $0x128] sm:$0xff] }
  0x6a   :  { %960 = vmatprep.subr.mxu0 %v397_v58  ;;  %954 = vmatpush3.msra.mxu1 %v402_v19 }
  0x6b   :  { %961 = vmatpush3.msra.mxu0 %v397_v58  ;;  %993 = vmatprep.subr.mxu1 %v586_v21  ;;  %v574_v58 = vld [vmem:[#allocation9 + $0x118] sm:$0xff] }
  0x6c   :  { %962 = vmatprep.subr.mxu0 %v396_v60 }
  0x6d   :  { %963 = vmatpush3.msra.mxu0 %v396_v60  ;;  %v572_v60 = vld [vmem:[#allocation9 + $0x108] sm:$0xff] }
  0x6e   :  { %964 = vmatprep.subr.mxu0 %v395_v62 }
  0x6f   :  { %965 = vmatpush3.msra.mxu0 %v395_v62 }
  0x70   :  { %966 = vmatprep.subr.mxu0 %v394_v0 }
  0x71   :  { %967 = vmatpush3.msra.mxu0 %v394_v0 }
  0x72   :  { %968 = vmatprep.subr.mxu0 %v393_v2 }
  0x73   :  { %969 = vmatpush3.msra.mxu0 %v393_v2 }
  0x74   :  { %970 = vmatprep.subr.mxu0 %v392_v8 }
  0x75   :  { %971 = vmatpush3.msra.mxu0 %v392_v8  ;;  %v709_v8 = vld [vmem:[%s1220_s6] ss:$0 sm:$0xff] }
  0x76   :  { %972 = vmatprep.subr.mxu0 %v391_v10 }
  0x77   :  { %973 = vmatpush3.msra.mxu0 %v391_v10 }
  0x78   :  { %974 = vmatprep.subr.mxu0 %v390_v12 }
  0x79   :  { %975 = vmatpush3.msra.mxu0 %v390_v12 }
  0x7a   :  { %976 = vmatprep.subr.mxu0 %v389_v14 }
  0x7b   :  { %977 = vmatpush3.msra.mxu0 %v389_v14 }
  0x7c   :  { %978 = vmatprep.subr.mxu0 %v388_v18 }
  0x7d   :  { %979 = vmatpush3.msra.mxu0 %v388_v18 }
  0x7e   :  { %980 = vmatprep.subr.mxu0 %v387_v20 }
  0x7f   :  { %981 = vmatpush3.msra.mxu0 %v387_v20 }
  0x80   :  { %982 = vmatprep.subr.mxu0 %v386_v22 }
  0x81   :  { %983 = vmatpush3.msra.mxu0 %v386_v22 }
  0x82   :  { %984 = vmatprep.subr.mxu0 %v385_v23 }
  0x83   :  { %985 = vmatpush3.msra.mxu0 %v385_v23 }
  0x84   :  { %986 = vmatprep.subr.mxu0 %v384_v24 }
  0x85   :  { %987 = vmatpush3.msra.mxu0 %v384_v24 }
  0x86   :  { %988 = vmatprep.subr.mxu0 %v383_v25 }
  0x87   :  { %989 = vmatpush3.msra.mxu0 %v383_v25 }
 0x107   :  { %v852_v26 = vpop.f32.mrf.mxu0 }
 0x108   :  { %v887_v27 = vpop.f32.mrf.mxu1 }
 0x109   :  { %v179_v28 = vpop.f32.mrf.mxu0  ;;  %v260_v30 = vadd.f32 %v887_v27, %v852_v26 }
 0x10a   :  { %v254_v29 = vpop.f32.mrf.mxu1 }
 0x10b   :  { %v255_v33 = vadd.f32 %v254_v29, %v179_v28 }
 0x128   :  { %v922_v31 = vpop.f32.mrf.mxu0 }
 0x129   :  { %v358_v34 = vadd.f32 %v922_v31, %v260_v30 }
 0x12a   :  { %v348_v36 = vpop.f32.mrf.mxu0 }
 0x12b   :  { %v367_v37 = vmul.f32 %v706_v32, %v358_v34  ;;  %v357_v38 = vadd.f32 %v348_v36, %v255_v33 }
 0x12d   :  { %v376_v39 = vadd.f32 %v707_v35, %v367_v37  ;;  %v366_v40 = vmul.f32 %v706_v32, %v357_v38 }
 0x12f   :  { %v378_v41 = vmax.f32 %v376_v39, 0.0  ;;  %v375_v42 = vadd.f32 %v707_v35, %v366_v40 }
 0x131   :  { %380 = vst [vmem:[#allocation3 + $0x10] sm:$0xff] %v378_v41  ;;  %v377_v43 = vmax.f32 %v375_v42, 0.0 }
 0x133   :  { %379 = vst [vmem:[#allocation3 + $0x8] sm:$0xff] %v377_v43  ;;  %955 = vmatprep.mubr.f32.mxu1 %v377_v43 }
 0x134   :  { %956 = vmatmul.mubr.f32.vlgmr.msra.gmra.mxu1 %v378_v41 }
 0x135   :  { %994 = vmatpush3.msra.mxu1 %v586_v21 }
 0x136   :  { %995 = vmatprep.subr.mxu1 %v585_v44 }
 0x137   :  { %996 = vmatpush3.msra.mxu1 %v585_v44 }
 0x138   :  { %997 = vmatprep.subr.mxu1 %v584_v45  ;;  %v569_v62 = vld [vmem:[#allocation3 + $0x11] sm:$0xff] }
 0x139   :  { %998 = vmatpush3.msra.mxu1 %v584_v45 }
 0x13a   :  { %v381_v48 = vld [vmem:[#allocation3 + $0x7] sm:$0xff]  ;;  %v382_v49 = vld [vmem:[#allocation3 + $0xf] sm:$0xff]  ;;  %999 = vmatprep.subr.mxu1 %v583_v46 }
 0x13b   :  { %v568_v50 = vld [vmem:[#allocation3 + $0x9] sm:$0xff]  ;;  %990 = vmatprep.mubr.f32.mxu0 %v381_v48  ;;  %1000 = vmatpush3.msra.mxu1 %v583_v46 }
 0x13c   :  { %1025 = vmatprep.mubr.f32.mxu1 %v568_v50  ;;  %991 = vmatmul.mubr.f32.vlgmr.msra.gmra.mxu0 %v382_v49 }
 0x13d   :  { %1001 = vmatprep.subr.mxu1 %v582_v47 }
 0x13e   :  { %1002 = vmatpush3.msra.mxu1 %v582_v47 }
 0x13f   :  { %1003 = vmatprep.subr.mxu1 %v581_v51 }
 0x140   :  { %1004 = vmatpush3.msra.mxu1 %v581_v51 }
 0x141   :  { %1005 = vmatprep.subr.mxu1 %v580_v52 }
 0x142   :  { %1006 = vmatpush3.msra.mxu1 %v580_v52 }
 0x143   :  { %1007 = vmatprep.subr.mxu1 %v579_v53 }
 0x144   :  { %1008 = vmatpush3.msra.mxu1 %v579_v53 }
 0x145   :  { %1009 = vmatprep.subr.mxu1 %v578_v54 }
 0x146   :  { %1010 = vmatpush3.msra.mxu1 %v578_v54 }
 0x147   :  { %1011 = vmatprep.subr.mxu1 %v577_v55 }
 0x148   :  { %1012 = vmatpush3.msra.mxu1 %v577_v55 }
 0x149   :  { %1013 = vmatprep.subr.mxu1 %v576_v56 }
 0x14a   :  { %1014 = vmatpush3.msra.mxu1 %v576_v56 }
 0x14b   :  { %1015 = vmatprep.subr.mxu1 %v575_v57 }
 0x14c   :  { %1016 = vmatpush3.msra.mxu1 %v575_v57 }
 0x14d   :  { %1017 = vmatprep.subr.mxu1 %v574_v58 }
 0x14e   :  { %1018 = vmatpush3.msra.mxu1 %v574_v58 }
 0x14f   :  { %1019 = vmatprep.subr.mxu1 %v573_v59 }
 0x150   :  { %1020 = vmatpush3.msra.mxu1 %v573_v59 }
 0x151   :  { %1021 = vmatprep.subr.mxu1 %v572_v60 }
 0x152   :  { %1022 = vmatpush3.msra.mxu1 %v572_v60 }
 0x153   :  { %1023 = vmatprep.subr.mxu1 %v571_v61 }
 0x154   :  { %1024 = vmatpush3.msra.mxu1 %v571_v61 }
 0x155   :  { %1026 = vmatmul.mubr.f32.vlgmr.msra.gmra.mxu1 %v569_v62 }
 0x1f4   :  { %v957_v63 = vpop.f32.mrf.mxu1 }
 0x1f6   :  { %v484_v1 = vpop.f32.mrf.mxu1 }
 0x1fc   :  { %v992_v0 = vpop.f32.mrf.mxu0 }
 0x1fd   :  { %v565_v3 = vadd.f32 %v992_v0, %v957_v63 }
 0x1fe   :  { %v559_v2 = vpop.f32.mrf.mxu0 }
 0x1ff   :  { %v560_v6 = vadd.f32 %v559_v2, %v484_v1 }
 0x215   :  { %v1027_v4 = vpop.f32.mrf.mxu1 }
 0x216   :  { %v663_v7 = vadd.f32 %v1027_v4, %v565_v3 }
 0x217   :  { %v653_v9 = vpop.f32.mrf.mxu1 }
 0x218   :  { %v672_v10 = vmul.f32 %v708_v5, %v663_v7  ;;  %v662_v11 = vadd.f32 %v653_v9, %v560_v6 }
 0x21a   :  { %v681_v12 = vadd.f32 %v709_v8, %v672_v10  ;;  %v671_v13 = vmul.f32 %v708_v5, %v662_v11 }
 0x21c   :  { %v680_v14 = vadd.f32 %v709_v8, %v671_v13  ;;  %v683_v17 = vadd.f32 %v681_v12, %v1189_v16 }
 0x21e   :  { %v682_v18 = vadd.f32 %v680_v14, %v1186_v15  ;;  %v685_v19 = vmax.f32 %v683_v17, 0.0 }
 0x220   :  { %v684_v20 = vmax.f32 %v682_v18, 0.0  ;;  %687 = vst [vmem:[#allocation10 + $0x8] sm:$0xff] %v685_v19 }
 0x222   :  { %686 = vst [vmem:[#allocation10] sm:$0xff] %v684_v20 }
 0x223   :  { %1106 = shalt.err (!%p1103_p5)
}
 0x224   :  { %699 = dma.vmem_to_hbm [thread:$0]  %s694_s22, 256, %s1221_s7, [#allocation6], %s1123_s29, %s1123_s29, %s1124_s30  }
 0x225   :  { %1119 = dma.done.wait [#allocation6], 256  }
 0x226   :  { %1120 = vsyncadd [#allocation6], 4294967040 }
 0x227   :  { %703 = vsyncpa [#allocation5], 1 }
 0x228   :  { %704 = vsyncpa [#allocation8], 1 }
 0x229   :  { %705 = vsyncpa [#allocation6], 1 }

// kernel: tpu_custom_call.1
= control target key start
LH: loop header
LB: loop body
LE: loop exit
PB: predicated region body
PF: predicated region fallthrough
CT: control target
= control target key end

     0   :  { %12 = vsyncpa [#allocation5], 0  ;;  %s1214_s0 = inlined_call_operand.hbm [shape: f32[16,128], index: 0, kind: input, shape index: {}]   ;;  %s1215_s1 = inlined_call_operand.hbm [shape: f32[3,128,128], index: 1, kind: input, shape index: {}]   ;;  %s1216_s2 = inlined_call_operand.hbm [shape: f32[3,128,128], index: 2, kind: input, shape index: {}]   ;;  %s1217_s3 = inlined_call_operand.vmem [shape: f32[1,128], index: 3, kind: input, shape index: {}]   ;;  %s1218_s4 = inlined_call_operand.vmem [shape: f32[1,128], index: 4, kind: input, shape index: {}]   ;;  %s1219_s5 = inlined_call_operand.vmem [shape: f32[1,128], index: 5, kind: input, shape index: {}]   ;;  %s1220_s6 = inlined_call_operand.vmem [shape: f32[1,128], index: 6, kind: input, shape index: {}]   ;;  %s1221_s7 = inlined_call_operand.hbm [shape: f32[16,128], index: 7, kind: output, shape index: {}]  }
   0x1   :  { %13 = vsyncpa [#allocation8], 0 }
   0x2   :  { %14 = vsyncpa [#allocation6], 0  ;;  %s1121_s24 = smov [#allocation7]   ;;  %s1122_s26 = smov [#allocation4]  }
   0x3   :  { %s32_s25 = sshll.u32 %s1121_s24, 4  ;;  %s20_s27 = sshll.u32 %s1122_s26, 4  ;;  %s33_s25 = int_to_ptr.vmem [resolvable:$true] %s32_s25  ;;  %s21_s27 = int_to_ptr.vmem [resolvable:$true] %s20_s27 }
   0x4   :  { %s1043_s28 = scalar_lea.vmem %s33_s25, 6144  ;;  %p1048_p1 = scmp.lt.s32.totalorder %s33_s25, %s33_s25 }
   0x5   :  { %p1044_p0 = scmp.ne.s32.totalorder %s33_s25, %s1043_s28  ;;  %p1049_p2 = scmp.lt.s32.totalorder %s1043_s28, %s1043_s28 }
   0x7   :  { %p1050_p3 = por %p1049_p2, %p1048_p1 }
   0x9   :  { %p1051_p4 = pnand %p1050_p3, %p1044_p0 }
   0xb   :  { %1054 = shalt.err (!%p1051_p4)
}
   0xc   :  { %s1123_s29 = smov 128   ;;  %s1124_s30 = smov 8  }
   0xd   :  { %38 = dma.hbm_to_vmem [thread:$0]  %s1215_s1, 6144, %s33_s25, [#allocation8], %s1123_s29, %s1123_s29, %s1124_s30  }
   0xe   :  { %s1063_s10 = scalar_lea.vmem %s21_s27, 256  ;;  %p1068_p6 = scmp.lt.s32.totalorder %s21_s27, %s21_s27 }
   0xf   :  { %p1064_p5 = scmp.ne.s32.totalorder %s21_s27, %s1063_s10  ;;  %p1069_p7 = scmp.lt.s32.totalorder %s1063_s10, %s1063_s10 }
  0x11   :  { %p1070_p8 = por %p1069_p7, %p1068_p6 }
  0x13   :  { %p1071_p9 = pnand %p1070_p8, %p1064_p5 }
  0x15   :  { %1074 = shalt.err (!%p1071_p9)
}
  0x16   :  { %26 = dma.hbm_to_vmem [thread:$0]  %s1214_s0, 256, %s21_s27, [#allocation5], %s1123_s29, %s1123_s29, %s1124_s30  }
  0x17   :  { %s1125_s13 = smov [#allocation9]  }
  0x18   :  { %s44_s14 = sshll.u32 %s1125_s13, 4  ;;  %s45_s14 = int_to_ptr.vmem [resolvable:$true] %s44_s14 }
  0x19   :  { %s1083_s15 = scalar_lea.vmem %s45_s14, 6144  ;;  %p1088_p11 = scmp.lt.s32.totalorder %s45_s14, %s45_s14 }
  0x1a   :  { %p1084_p10 = scmp.ne.s32.totalorder %s45_s14, %s1083_s15  ;;  %p1089_p12 = scmp.lt.s32.totalorder %s1083_s15, %s1083_s15 }
  0x1c   :  { %p1090_p13 = por %p1089_p12, %p1088_p11 }
  0x1e   :  { %p1091_p0 = pnand %p1090_p13, %p1084_p10 }
  0x20   :  { %1094 = shalt.err (!%p1091_p0)
}
  0x21   :  { %50 = dma.hbm_to_vmem [thread:$0]  %s1216_s2, 6144, %s45_s14, [#allocation8], %s1123_s29, %s1123_s29, %s1124_s30  }
  0x22   :  { %1115 = dma.done.wait [#allocation5], 256  }
  0x23   :  { %1116 = vsyncadd [#allocation5], 4294967040 }
  0x24   :  { %1117 = dma.done.wait [#allocation8], 12288  }
  0x25   :  { %1118 = vsyncadd [#allocation8], 4294955008  ;;  %v1126_v0 = vmov 0.0   ;;  %v112_v1 = vld [vmem:[#allocation7 + $0xf8] sm:$0xff]  ;;  %v111_v3 = vld [vmem:[#allocation7 + $0xf0] sm:$0xff]  ;;  %s1127_s21 = smov [#allocation10]  }
  0x26   :  { %70 = vst [vmem:[#allocation2 + $0x7] sm:$0x1] %v1126_v0  ;;  %71 = vst [vmem:[#allocation2 + $0x18] sm:$0x1] %v1126_v0  ;;  %v93_v2 = vld [vmem:[#allocation7 + $0x78] sm:$0xff]  ;;  %818 = vmatprep.subr.mxu0 %v112_v1  ;;  %v92_v4 = vld [vmem:[#allocation7 + $0x70] sm:$0xff] }
  0x27   :  { %72 = vst [vmem:[#allocation3 + $0x7] sm:$0x1] %v1126_v0  ;;  %73 = vst [vmem:[#allocation3 + $0x18] sm:$0x1] %v1126_v0  ;;  %853 = vmatprep.subr.mxu1 %v93_v2  ;;  %819 = vmatpush3.msra.mxu0 %v112_v1  ;;  %v110_v5 = vld [vmem:[#allocation7 + $0xe8] sm:$0xff]  ;;  %v109_v7 = vld [vmem:[#allocation7 + $0xe0] sm:$0xff] }
  0x28   :  { %854 = vmatpush3.msra.mxu1 %v93_v2  ;;  %v91_v6 = vld [vmem:[#allocation7 + $0x68] sm:$0xff]  ;;  %820 = vmatprep.subr.mxu0 %v111_v3  ;;  %v90_v8 = vld [vmem:[#allocation7 + $0x60] sm:$0xff]  ;;  %v108_v9 = vld [vmem:[#allocation7 + $0xd8] sm:$0xff]  ;;  %s693_s22 = sshll.u32 %s1127_s21, 4  ;;  %s694_s22 = int_to_ptr.vmem [resolvable:$true] %s693_s22 }
  0x29   :  { %855 = vmatprep.subr.mxu1 %v92_v4  ;;  %821 = vmatpush3.msra.mxu0 %v111_v3  ;;  %v89_v10 = vld [vmem:[#allocation7 + $0x58] sm:$0xff]  ;;  %v107_v11 = vld [vmem:[#allocation7 + $0xd0] sm:$0xff]  ;;  %v106_v13 = vld [vmem:[#allocation7 + $0xc8] sm:$0xff]  ;;  %p1100_p2 = scmp.lt.s32.totalorder %s694_s22, %s694_s22 }
  0x2a   :  { %856 = vmatpush3.msra.mxu1 %v92_v4  ;;  %822 = vmatprep.subr.mxu0 %v110_v5  ;;  %v88_v12 = vld [vmem:[#allocation7 + $0x50] sm:$0xff]  ;;  %v87_v14 = vld [vmem:[#allocation7 + $0x48] sm:$0xff]  ;;  %v1189_v16 = vld [vmem:[#allocation4 + $0x8] sm:$0xff] }
  0x2b   :  { %857 = vmatprep.subr.mxu1 %v91_v6  ;;  %823 = vmatpush3.msra.mxu0 %v110_v5  ;;  %v1186_v15 = vld [vmem:[#allocation4] sm:$0xff]  ;;  %v105_v17 = vld [vmem:[#allocation7 + $0xc0] sm:$0xff]  ;;  %75 = vst [vmem:[#allocation2 + $0x10] sm:$0xff] %v1189_v16  ;;  %v104_v19 = vld [vmem:[#allocation7 + $0xb8] sm:$0xff] }
  0x2c   :  { %858 = vmatpush3.msra.mxu1 %v91_v6  ;;  %824 = vmatprep.subr.mxu0 %v109_v7  ;;  %74 = vst [vmem:[#allocation2 + $0x8] sm:$0xff] %v1186_v15  ;;  %v86_v18 = vld [vmem:[#allocation7 + $0x40] sm:$0xff]  ;;  %v85_v20 = vld [vmem:[#allocation7 + $0x38] sm:$0xff]  ;;  %v103_v21 = vld [vmem:[#allocation7 + $0xb0] sm:$0xff] }
  0x2d   :  { %859 = vmatprep.subr.mxu1 %v90_v8  ;;  %825 = vmatpush3.msra.mxu0 %v109_v7  ;;  %v84_v22 = vld [vmem:[#allocation7 + $0x30] sm:$0xff]  ;;  %v102_v23 = vld [vmem:[#allocation7 + $0xa8] sm:$0xff]  ;;  %v101_v25 = vld [vmem:[#allocation7 + $0xa0] sm:$0xff] }
  0x2e   :  { %860 = vmatpush3.msra.mxu1 %v90_v8  ;;  %826 = vmatprep.subr.mxu0 %v108_v9  ;;  %v83_v24 = vld [vmem:[#allocation7 + $0x28] sm:$0xff]  ;;  %v82_v26 = vld [vmem:[#allocation7 + $0x20] sm:$0xff]  ;;  %v100_v27 = vld [vmem:[#allocation7 + $0x98] sm:$0xff] }
  0x2f   :  { %861 = vmatprep.subr.mxu1 %v89_v10  ;;  %827 = vmatpush3.msra.mxu0 %v108_v9  ;;  %v81_v28 = vld [vmem:[#allocation7 + $0x18] sm:$0xff]  ;;  %v99_v29 = vld [vmem:[#allocation7 + $0x90] sm:$0xff]  ;;  %v98_v31 = vld [vmem:[#allocation7 + $0x88] sm:$0xff] }
  0x30   :  { %862 = vmatpush3.msra.mxu1 %v89_v10  ;;  %828 = vmatprep.subr.mxu0 %v107_v11  ;;  %v80_v30 = vld [vmem:[#allocation7 + $0x10] sm:$0xff]  ;;  %v79_v32 = vld [vmem:[#allocation7 + $0x8] sm:$0xff]  ;;  %v97_v33 = vld [vmem:[#allocation7 + $0x80] sm:$0xff] }
  0x31   :  { %863 = vmatprep.subr.mxu1 %v88_v12  ;;  %829 = vmatpush3.msra.mxu0 %v107_v11  ;;  %v78_v34 = vld [vmem:[#allocation7] sm:$0xff]  ;;  %v281_v37 = vld [vmem:[#allocation7 + $0x178] sm:$0xff]  ;;  %v280_v39 = vld [vmem:[#allocation7 + $0x170] sm:$0xff] }
  0x32   :  { %864 = vmatpush3.msra.mxu1 %v88_v12  ;;  %830 = vmatprep.subr.mxu0 %v106_v13  ;;  %v279_v40 = vld [vmem:[#allocation7 + $0x168] sm:$0xff]  ;;  %v278_v41 = vld [vmem:[#allocation7 + $0x160] sm:$0xff]  ;;  %v277_v42 = vld [vmem:[#allocation7 + $0x158] sm:$0xff] }
  0x33   :  { %865 = vmatprep.subr.mxu1 %v87_v14  ;;  %831 = vmatpush3.msra.mxu0 %v106_v13  ;;  %v76_v35 = vld [vmem:[#allocation2 + $0x7] sm:$0xff]  ;;  %v77_v36 = vld [vmem:[#allocation2 + $0xf] sm:$0xff]  ;;  %v275_v44 = vld [vmem:[#allocation7 + $0x148] sm:$0xff] }
  0x34   :  { %866 = vmatpush3.msra.mxu1 %v87_v14  ;;  %832 = vmatprep.subr.mxu0 %v105_v17  ;;  %v263_v38 = vld [vmem:[#allocation2 + $0x9] sm:$0xff]  ;;  %v276_v43 = vld [vmem:[#allocation7 + $0x150] sm:$0xff]  ;;  %v271_v48 = vld [vmem:[#allocation7 + $0x128] sm:$0xff] }
  0x35   :  { %867 = vmatprep.subr.mxu1 %v86_v18  ;;  %833 = vmatpush3.msra.mxu0 %v105_v17  ;;  %v274_v45 = vld [vmem:[#allocation7 + $0x140] sm:$0xff]  ;;  %v273_v46 = vld [vmem:[#allocation7 + $0x138] sm:$0xff]  ;;  %v272_v47 = vld [vmem:[#allocation7 + $0x130] sm:$0xff] }
  0x36   :  { %868 = vmatpush3.msra.mxu1 %v86_v18  ;;  %834 = vmatprep.subr.mxu0 %v104_v19  ;;  %v270_v49 = vld [vmem:[#allocation7 + $0x120] sm:$0xff]  ;;  %v269_v50 = vld [vmem:[#allocation7 + $0x118] sm:$0xff]  ;;  %v268_v51 = vld [vmem:[#allocation7 + $0x110] sm:$0xff] }
  0x37   :  { %869 = vmatprep.subr.mxu1 %v85_v20  ;;  %835 = vmatpush3.msra.mxu0 %v104_v19  ;;  %v267_v52 = vld [vmem:[#allocation7 + $0x108] sm:$0xff]  ;;  %v266_v53 = vld [vmem:[#allocation7 + $0x100] sm:$0xff]  ;;  %v417_v55 = vld [vmem:[#allocation9 + $0xf8] sm:$0xff] }
  0x38   :  { %870 = vmatpush3.msra.mxu1 %v85_v20  ;;  %836 = vmatprep.subr.mxu0 %v103_v21  ;;  %v264_v54 = vld [vmem:[#allocation2 + $0x11] sm:$0xff]  ;;  %v398_v56 = vld [vmem:[#allocation9 + $0x78] sm:$0xff]  ;;  %v416_v57 = vld [vmem:[#allocation9 + $0xf0] sm:$0xff] }
  0x39   :  { %871 = vmatprep.subr.mxu1 %v84_v22  ;;  %837 = vmatpush3.msra.mxu0 %v103_v21  ;;  %v397_v58 = vld [vmem:[#allocation9 + $0x70] sm:$0xff]  ;;  %v415_v59 = vld [vmem:[#allocation9 + $0xe8] sm:$0xff]  ;;  %v414_v61 = vld [vmem:[#allocation9 + $0xe0] sm:$0xff] }
  0x3a   :  { %872 = vmatpush3.msra.mxu1 %v84_v22  ;;  %838 = vmatprep.subr.mxu0 %v102_v23  ;;  %v396_v60 = vld [vmem:[#allocation9 + $0x68] sm:$0xff]  ;;  %v395_v62 = vld [vmem:[#allocation9 + $0x60] sm:$0xff]  ;;  %v413_v63 = vld [vmem:[#allocation9 + $0xd8] sm:$0xff] }
  0x3b   :  { %873 = vmatprep.subr.mxu1 %v83_v24  ;;  %839 = vmatpush3.msra.mxu0 %v102_v23  ;;  %v394_v0 = vld [vmem:[#allocation9 + $0x58] sm:$0xff]  ;;  %v412_v1 = vld [vmem:[#allocation9 + $0xd0] sm:$0xff]  ;;  %v411_v3 = vld [vmem:[#allocation9 + $0xc8] sm:$0xff] }
  0x3c   :  { %874 = vmatpush3.msra.mxu1 %v83_v24  ;;  %840 = vmatprep.subr.mxu0 %v101_v25  ;;  %v393_v2 = vld [vmem:[#allocation9 + $0x50] sm:$0xff]  ;;  %v410_v4 = vld [vmem:[#allocation9 + $0xc0] sm:$0xff]  ;;  %v409_v5 = vld [vmem:[#allocation9 + $0xb8] sm:$0xff] }
  0x3d   :  { %875 = vmatprep.subr.mxu1 %v82_v26  ;;  %841 = vmatpush3.msra.mxu0 %v101_v25  ;;  %v408_v6 = vld [vmem:[#allocation9 + $0xb0] sm:$0xff]  ;;  %v407_v7 = vld [vmem:[#allocation9 + $0xa8] sm:$0xff]  ;;  %v406_v9 = vld [vmem:[#allocation9 + $0xa0] sm:$0xff] }
  0x3e   :  { %876 = vmatpush3.msra.mxu1 %v82_v26  ;;  %842 = vmatprep.subr.mxu0 %v100_v27  ;;  %v392_v8 = vld [vmem:[#allocation9 + $0x48] sm:$0xff]  ;;  %v391_v10 = vld [vmem:[#allocation9 + $0x40] sm:$0xff]  ;;  %v405_v11 = vld [vmem:[#allocation9 + $0x98] sm:$0xff] }
  0x3f   :  { %877 = vmatprep.subr.mxu1 %v81_v28  ;;  %843 = vmatpush3.msra.mxu0 %v100_v27  ;;  %v390_v12 = vld [vmem:[#allocation9 + $0x38] sm:$0xff]  ;;  %v404_v13 = vld [vmem:[#allocation9 + $0x90] sm:$0xff]  ;;  %v403_v17 = vld [vmem:[#allocation9 + $0x88] sm:$0xff] }
  0x40   :  { %878 = vmatpush3.msra.mxu1 %v81_v28  ;;  %844 = vmatprep.subr.mxu0 %v99_v29  ;;  %v389_v14 = vld [vmem:[#allocation9 + $0x30] sm:$0xff]  ;;  %v388_v18 = vld [vmem:[#allocation9 + $0x28] sm:$0xff]  ;;  %v402_v19 = vld [vmem:[#allocation9 + $0x80] sm:$0xff] }
  0x41   :  { %879 = vmatprep.subr.mxu1 %v80_v30  ;;  %845 = vmatpush3.msra.mxu0 %v99_v29  ;;  %v387_v20 = vld [vmem:[#allocation9 + $0x20] sm:$0xff]  ;;  %v586_v21 = vld [vmem:[#allocation9 + $0x178] sm:$0xff]  ;;  %v385_v23 = vld [vmem:[#allocation9 + $0x10] sm:$0xff] }
  0x42   :  { %880 = vmatpush3.msra.mxu1 %v80_v30  ;;  %846 = vmatprep.subr.mxu0 %v98_v31  ;;  %v386_v22 = vld [vmem:[#allocation9 + $0x18] sm:$0xff]  ;;  %v384_v24 = vld [vmem:[#allocation9 + $0x8] sm:$0xff]  ;;  %v383_v25 = vld [vmem:[#allocation9] sm:$0xff] }
  0x43   :  { %881 = vmatprep.subr.mxu1 %v79_v32  ;;  %847 = vmatpush3.msra.mxu0 %v98_v31 }
  0x44   :  { %882 = vmatpush3.msra.mxu1 %v79_v32  ;;  %848 = vmatprep.subr.mxu0 %v97_v33  ;;  %v706_v32 = vld [vmem:[%s1217_s3] ss:$0 sm:$0xff] }
  0x45   :  { %883 = vmatprep.subr.mxu1 %v78_v34  ;;  %849 = vmatpush3.msra.mxu0 %v97_v33 }
  0x46   :  { %850 = vmatprep.mubr.f32.mxu0 %v1186_v15  ;;  %884 = vmatpush3.msra.mxu1 %v78_v34 }
  0x47   :  { %885 = vmatprep.mubr.f32.mxu1 %v76_v35  ;;  %851 = vmatmul.mubr.f32.vlgmr.msra.gmra.mxu0 %v1189_v16  ;;  %v707_v35 = vld [vmem:[%s1218_s4] ss:$0 sm:$0xff] }
  0x48   :  { %886 = vmatmul.mubr.f32.vlgmr.msra.gmra.mxu1 %v77_v36  ;;  %888 = vmatprep.subr.mxu0 %v281_v37 }
  0x49   :  { %920 = vmatprep.mubr.f32.mxu0 %v263_v38  ;;  %889 = vmatpush3.msra.mxu0 %v281_v37 }
  0x4a   :  { %890 = vmatprep.subr.mxu0 %v280_v39  ;;  %923 = vmatprep.subr.mxu1 %v417_v55 }
  0x4b   :  { %891 = vmatpush3.msra.mxu0 %v280_v39  ;;  %924 = vmatpush3.msra.mxu1 %v417_v55  ;;  %v577_v55 = vld [vmem:[#allocation9 + $0x130] sm:$0xff] }
  0x4c   :  { %892 = vmatprep.subr.mxu0 %v279_v40  ;;  %925 = vmatprep.subr.mxu1 %v416_v57 }
  0x4d   :  { %893 = vmatpush3.msra.mxu0 %v279_v40  ;;  %926 = vmatpush3.msra.mxu1 %v416_v57  ;;  %v575_v57 = vld [vmem:[#allocation9 + $0x120] sm:$0xff] }
  0x4e   :  { %894 = vmatprep.subr.mxu0 %v278_v41  ;;  %927 = vmatprep.subr.mxu1 %v415_v59 }
  0x4f   :  { %895 = vmatpush3.msra.mxu0 %v278_v41  ;;  %928 = vmatpush3.msra.mxu1 %v415_v59  ;;  %v573_v59 = vld [vmem:[#allocation9 + $0x110] sm:$0xff] }
  0x50   :  { %896 = vmatprep.subr.mxu0 %v277_v42  ;;  %929 = vmatprep.subr.mxu1 %v414_v61 }
  0x51   :  { %897 = vmatpush3.msra.mxu0 %v277_v42  ;;  %930 = vmatpush3.msra.mxu1 %v414_v61  ;;  %v571_v61 = vld [vmem:[#allocation9 + $0x100] sm:$0xff] }
  0x52   :  { %898 = vmatprep.subr.mxu0 %v276_v43  ;;  %931 = vmatprep.subr.mxu1 %v413_v63 }
  0x53   :  { %899 = vmatpush3.msra.mxu0 %v276_v43  ;;  %932 = vmatpush3.msra.mxu1 %v413_v63 }
  0x54   :  { %900 = vmatprep.subr.mxu0 %v275_v44  ;;  %933 = vmatprep.subr.mxu1 %v412_v1 }
  0x55   :  { %901 = vmatpush3.msra.mxu0 %v275_v44  ;;  %934 = vmatpush3.msra.mxu1 %v412_v1  ;;  %v585_v44 = vld [vmem:[#allocation9 + $0x170] sm:$0xff] }
  0x56   :  { %902 = vmatprep.subr.mxu0 %v274_v45  ;;  %935 = vmatprep.subr.mxu1 %v411_v3 }
  0x57   :  { %903 = vmatpush3.msra.mxu0 %v274_v45  ;;  %936 = vmatpush3.msra.mxu1 %v411_v3  ;;  %v584_v45 = vld [vmem:[#allocation9 + $0x168] sm:$0xff] }
  0x58   :  { %904 = vmatprep.subr.mxu0 %v273_v46  ;;  %937 = vmatprep.subr.mxu1 %v410_v4 }
  0x59   :  { %905 = vmatpush3.msra.mxu0 %v273_v46  ;;  %938 = vmatpush3.msra.mxu1 %v410_v4  ;;  %v583_v46 = vld [vmem:[#allocation9 + $0x160] sm:$0xff] }
  0x5a   :  { %906 = vmatprep.subr.mxu0 %v272_v47  ;;  %939 = vmatprep.subr.mxu1 %v409_v5 }
  0x5b   :  { %907 = vmatpush3.msra.mxu0 %v272_v47  ;;  %940 = vmatpush3.msra.mxu1 %v409_v5  ;;  %v582_v47 = vld [vmem:[#allocation9 + $0x158] sm:$0xff]  ;;  %v708_v5 = vld [vmem:[%s1219_s5] ss:$0 sm:$0xff]  ;;  %s1095_s5 = scalar_lea.vmem %s694_s22, 256 }
  0x5c   :  { %908 = vmatprep.subr.mxu0 %v271_v48  ;;  %941 = vmatprep.subr.mxu1 %v408_v6  ;;  %p1096_p1 = scmp.ne.s32.totalorder %s694_s22, %s1095_s5  ;;  %p1101_p3 = scmp.lt.s32.totalorder %s1095_s5, %s1095_s5 }
  0x5d   :  { %909 = vmatpush3.msra.mxu0 %v271_v48  ;;  %942 = vmatpush3.msra.mxu1 %v408_v6 }
  0x5e   :  { %910 = vmatprep.subr.mxu0 %v270_v49  ;;  %943 = vmatprep.subr.mxu1 %v407_v7  ;;  %p1102_p4 = por %p1101_p3, %p1100_p2 }
  0x5f   :  { %911 = vmatpush3.msra.mxu0 %v270_v49  ;;  %944 = vmatpush3.msra.mxu1 %v407_v7 }
  0x60   :  { %912 = vmatprep.subr.mxu0 %v269_v50  ;;  %945 = vmatprep.subr.mxu1 %v406_v9  ;;  %p1103_p5 = pnand %p1102_p4, %p1096_p1 }
  0x61   :  { %913 = vmatpush3.msra.mxu0 %v269_v50  ;;  %946 = vmatpush3.msra.mxu1 %v406_v9 }
  0x62   :  { %914 = vmatprep.subr.mxu0 %v268_v51  ;;  %947 = vmatprep.subr.mxu1 %v405_v11 }
  0x63   :  { %915 = vmatpush3.msra.mxu0 %v268_v51  ;;  %948 = vmatpush3.msra.mxu1 %v405_v11  ;;  %v581_v51 = vld [vmem:[#allocation9 + $0x150] sm:$0xff] }
  0x64   :  { %916 = vmatprep.subr.mxu0 %v267_v52  ;;  %949 = vmatprep.subr.mxu1 %v404_v13 }
  0x65   :  { %917 = vmatpush3.msra.mxu0 %v267_v52  ;;  %950 = vmatpush3.msra.mxu1 %v404_v13  ;;  %v580_v52 = vld [vmem:[#allocation9 + $0x148] sm:$0xff] }
  0x66   :  { %918 = vmatprep.subr.mxu0 %v266_v53  ;;  %951 = vmatprep.subr.mxu1 %v403_v17 }
  0x67   :  { %919 = vmatpush3.msra.mxu0 %v266_v53  ;;  %952 = vmatpush3.msra.mxu1 %v403_v17  ;;  %v579_v53 = vld [vmem:[#allocation9 + $0x140] sm:$0xff] }
  0x68   :  { %921 = vmatmul.mubr.f32.vlgmr.msra.gmra.mxu0 %v264_v54  ;;  %958 = vmatprep.subr.mxu0 %v398_v56  ;;  %v578_v54 = vld [vmem:[#allocation9 + $0x138] sm:$0xff] }
  0x69   :  { %959 = vmatpush3.msra.mxu0 %v398_v56  ;;  %953 = vmatprep.subr.mxu1 %v402_v19  ;;  %v576_v56 = vld [vmem:[#allocation9 + $0x128] sm:$0xff] }
  0x6a   :  { %960 = vmatprep.subr.mxu0 %v397_v58  ;;  %954 = vmatpush3.msra.mxu1 %v402_v19 }
  0x6b   :  { %961 = vmatpush3.msra.mxu0 %v397_v58  ;;  %993 = vmatprep.subr.mxu1 %v586_v21  ;;  %v574_v58 = vld [vmem:[#allocation9 + $0x118] sm:$0xff] }
  0x6c   :  { %962 = vmatprep.subr.mxu0 %v396_v60 }
  0x6d   :  { %963 = vmatpush3.msra.mxu0 %v396_v60  ;;  %v572_v60 = vld [vmem:[#allocation9 + $0x108] sm:$0xff] }
  0x6e   :  { %964 = vmatprep.subr.mxu0 %v395_v62 }
  0x6f   :  { %965 = vmatpush3.msra.mxu0 %v395_v62 }
  0x70   :  { %966 = vmatprep.subr.mxu0 %v394_v0 }
  0x71   :  { %967 = vmatpush3.msra.mxu0 %v394_v0 }
  0x72   :  { %968 = vmatprep.subr.mxu0 %v393_v2 }
  0x73   :  { %969 = vmatpush3.msra.mxu0 %v393_v2 }
  0x74   :  { %970 = vmatprep.subr.mxu0 %v392_v8 }
  0x75   :  { %971 = vmatpush3.msra.mxu0 %v392_v8  ;;  %v709_v8 = vld [vmem:[%s1220_s6] ss:$0 sm:$0xff] }
  0x76   :  { %972 = vmatprep.subr.mxu0 %v391_v10 }
  0x77   :  { %973 = vmatpush3.msra.mxu0 %v391_v10 }
  0x78   :  { %974 = vmatprep.subr.mxu0 %v390_v12 }
  0x79   :  { %975 = vmatpush3.msra.mxu0 %v390_v12 }
  0x7a   :  { %976 = vmatprep.subr.mxu0 %v389_v14 }
  0x7b   :  { %977 = vmatpush3.msra.mxu0 %v389_v14 }
  0x7c   :  { %978 = vmatprep.subr.mxu0 %v388_v18 }
  0x7d   :  { %979 = vmatpush3.msra.mxu0 %v388_v18 }
  0x7e   :  { %980 = vmatprep.subr.mxu0 %v387_v20 }
  0x7f   :  { %981 = vmatpush3.msra.mxu0 %v387_v20 }
  0x80   :  { %982 = vmatprep.subr.mxu0 %v386_v22 }
  0x81   :  { %983 = vmatpush3.msra.mxu0 %v386_v22 }
  0x82   :  { %984 = vmatprep.subr.mxu0 %v385_v23 }
  0x83   :  { %985 = vmatpush3.msra.mxu0 %v385_v23 }
  0x84   :  { %986 = vmatprep.subr.mxu0 %v384_v24 }
  0x85   :  { %987 = vmatpush3.msra.mxu0 %v384_v24 }
  0x86   :  { %988 = vmatprep.subr.mxu0 %v383_v25 }
  0x87   :  { %989 = vmatpush3.msra.mxu0 %v383_v25 }
 0x107   :  { %v852_v26 = vpop.f32.mrf.mxu0 }
 0x108   :  { %v887_v27 = vpop.f32.mrf.mxu1 }
 0x109   :  { %v179_v28 = vpop.f32.mrf.mxu0  ;;  %v260_v30 = vadd.f32 %v887_v27, %v852_v26 }
 0x10a   :  { %v254_v29 = vpop.f32.mrf.mxu1 }
 0x10b   :  { %v255_v33 = vadd.f32 %v254_v29, %v179_v28 }
 0x128   :  { %v922_v31 = vpop.f32.mrf.mxu0 }
 0x129   :  { %v358_v34 = vadd.f32 %v922_v31, %v260_v30 }
 0x12a   :  { %v348_v36 = vpop.f32.mrf.mxu0 }
 0x12b   :  { %v367_v37 = vmul.f32 %v706_v32, %v358_v34  ;;  %v357_v38 = vadd.f32 %v348_v36, %v255_v33 }
 0x12d   :  { %v376_v39 = vadd.f32 %v707_v35, %v367_v37  ;;  %v366_v40 = vmul.f32 %v706_v32, %v357_v38 }
 0x12f   :  { %v378_v41 = vmax.f32 %v376_v39, 0.0  ;;  %v375_v42 = vadd.f32 %v707_v35, %v366_v40 }
 0x131   :  { %380 = vst [vmem:[#allocation3 + $0x10] sm:$0xff] %v378_v41  ;;  %v377_v43 = vmax.f32 %v375_v42, 0.0 }
 0x133   :  { %379 = vst [vmem:[#allocation3 + $0x8] sm:$0xff] %v377_v43  ;;  %955 = vmatprep.mubr.f32.mxu1 %v377_v43 }
 0x134   :  { %956 = vmatmul.mubr.f32.vlgmr.msra.gmra.mxu1 %v378_v41 }
 0x135   :  { %994 = vmatpush3.msra.mxu1 %v586_v21 }
 0x136   :  { %995 = vmatprep.subr.mxu1 %v585_v44 }
 0x137   :  { %996 = vmatpush3.msra.mxu1 %v585_v44 }
 0x138   :  { %997 = vmatprep.subr.mxu1 %v584_v45  ;;  %v569_v62 = vld [vmem:[#allocation3 + $0x11] sm:$0xff] }
 0x139   :  { %998 = vmatpush3.msra.mxu1 %v584_v45 }
 0x13a   :  { %v381_v48 = vld [vmem:[#allocation3 + $0x7] sm:$0xff]  ;;  %v382_v49 = vld [vmem:[#allocation3 + $0xf] sm:$0xff]  ;;  %999 = vmatprep.subr.mxu1 %v583_v46 }
 0x13b   :  { %v568_v50 = vld [vmem:[#allocation3 + $0x9] sm:$0xff]  ;;  %990 = vmatprep.mubr.f32.mxu0 %v381_v48  ;;  %1000 = vmatpush3.msra.mxu1 %v583_v46 }
 0x13c   :  { %1025 = vmatprep.mubr.f32.mxu1 %v568_v50  ;;  %991 = vmatmul.mubr.f32.vlgmr.msra.gmra.mxu0 %v382_v49 }
 0x13d   :  { %1001 = vmatprep.subr.mxu1 %v582_v47 }
 0x13e   :  { %1002 = vmatpush3.msra.mxu1 %v582_v47 }
 0x13f   :  { %1003 = vmatprep.subr.mxu1 %v581_v51 }
 0x140   :  { %1004 = vmatpush3.msra.mxu1 %v581_v51 }
 0x141   :  { %1005 = vmatprep.subr.mxu1 %v580_v52 }
 0x142   :  { %1006 = vmatpush3.msra.mxu1 %v580_v52 }
 0x143   :  { %1007 = vmatprep.subr.mxu1 %v579_v53 }
 0x144   :  { %1008 = vmatpush3.msra.mxu1 %v579_v53 }
 0x145   :  { %1009 = vmatprep.subr.mxu1 %v578_v54 }
 0x146   :  { %1010 = vmatpush3.msra.mxu1 %v578_v54 }
 0x147   :  { %1011 = vmatprep.subr.mxu1 %v577_v55 }
 0x148   :  { %1012 = vmatpush3.msra.mxu1 %v577_v55 }
 0x149   :  { %1013 = vmatprep.subr.mxu1 %v576_v56 }
 0x14a   :  { %1014 = vmatpush3.msra.mxu1 %v576_v56 }
 0x14b   :  { %1015 = vmatprep.subr.mxu1 %v575_v57 }
 0x14c   :  { %1016 = vmatpush3.msra.mxu1 %v575_v57 }
 0x14d   :  { %1017 = vmatprep.subr.mxu1 %v574_v58 }
 0x14e   :  { %1018 = vmatpush3.msra.mxu1 %v574_v58 }
 0x14f   :  { %1019 = vmatprep.subr.mxu1 %v573_v59 }
 0x150   :  { %1020 = vmatpush3.msra.mxu1 %v573_v59 }
 0x151   :  { %1021 = vmatprep.subr.mxu1 %v572_v60 }
 0x152   :  { %1022 = vmatpush3.msra.mxu1 %v572_v60 }
 0x153   :  { %1023 = vmatprep.subr.mxu1 %v571_v61 }
 0x154   :  { %1024 = vmatpush3.msra.mxu1 %v571_v61 }
 0x155   :  { %1026 = vmatmul.mubr.f32.vlgmr.msra.gmra.mxu1 %v569_v62 }
 0x1f4   :  { %v957_v63 = vpop.f32.mrf.mxu1 }
 0x1f6   :  { %v484_v1 = vpop.f32.mrf.mxu1 }
 0x1fc   :  { %v992_v0 = vpop.f32.mrf.mxu0 }
 0x1fd   :  { %v565_v3 = vadd.f32 %v992_v0, %v957_v63 }
 0x1fe   :  { %v559_v2 = vpop.f32.mrf.mxu0 }
 0x1ff   :  { %v560_v6 = vadd.f32 %v559_v2, %v484_v1 }
 0x215   :  { %v1027_v4 = vpop.f32.mrf.mxu1 }
 0x216   :  { %v663_v7 = vadd.f32 %v1027_v4, %v565_v3 }
 0x217   :  { %v653_v9 = vpop.f32.mrf.mxu1 }
 0x218   :  { %v672_v10 = vmul.f32 %v708_v5, %v663_v7  ;;  %v662_v11 = vadd.f32 %v653_v9, %v560_v6 }
 0x21a   :  { %v681_v12 = vadd.f32 %v709_v8, %v672_v10  ;;  %v671_v13 = vmul.f32 %v708_v5, %v662_v11 }
 0x21c   :  { %v680_v14 = vadd.f32 %v709_v8, %v671_v13  ;;  %v683_v17 = vadd.f32 %v681_v12, %v1189_v16 }
 0x21e   :  { %v682_v18 = vadd.f32 %v680_v14, %v1186_v15  ;;  %v685_v19 = vmax.f32 %v683_v17, 0.0 }
 0x220   :  { %v684_v20 = vmax.f32 %v682_v18, 0.0  ;;  %687 = vst [vmem:[#allocation10 + $0x8] sm:$0xff] %v685_v19 }
 0x222   :  { %686 = vst [vmem:[#allocation10] sm:$0xff] %v684_v20 }
 0x223   :  { %1106 = shalt.err (!%p1103_p5)
}
 0x224   :  { %699 = dma.vmem_to_hbm [thread:$0]  %s694_s22, 256, %s1221_s7, [#allocation6], %s1123_s29, %s1123_s29, %s1124_s30  }
 0x225   :  { %1119 = dma.done.wait [#allocation6], 256  }
 0x226   :  { %1120 = vsyncadd [#allocation6], 4294967040 }
 0x227   :  { %703 = vsyncpa [#allocation5], 1 }
 0x228   :  { %704 = vsyncpa [#allocation8], 1 }
 0x229   :  { %705 = vsyncpa [#allocation6], 1 }

</bundles_post_ra>
